<compile_context>
chip_gen: v6e
topology: v6e:2x2x1
jax: 0.10.0
libtpu: 0.0.40
codegen_flags: <defaults>
</compile_context>

<pallas_src>
import jax
import jax.numpy as jnp
from jax.experimental import pallas as pl
from jax.experimental.pallas import tpu as pltpu


def _calc_out(s, k, st):
    return (s - k) // st + 1


def _geometry(state_dim):
    c, h, w = state_dim
    g = dict(C=c, H=h, W=w)
    g["OH1"], g["OW1"] = _calc_out(h, 8, 4), _calc_out(w, 8, 4)
    g["OH2"], g["OW2"] = _calc_out(g["OH1"], 4, 2), _calc_out(g["OW1"], 4, 2)
    g["OH3"], g["OW3"] = _calc_out(g["OH2"], 3, 1), _calc_out(g["OW2"], 3, 1)
    g["HB1"], g["WB1"] = h // 4, w // 4          # conv1 stride-blocks
    g["HB2"], g["WB2"] = g["OH1"] // 2, g["OW1"] // 2  # conv2 stride-blocks
    g["P"] = g["OH3"] * g["OW3"]
    g["feat"] = 64 * g["P"]
    # Divisibility conditions used by the in-kernel window decomposition.
    # TODO(synk): pad H/W inside the wrapper for geometries that violate these.
    assert h % 4 == 0 and w % 4 == 0, "H, W must be multiples of 4"
    assert g["OH1"] % 2 == 0 and g["OW1"] % 2 == 0
    assert g["OH3"] >= 1 and g["OW3"] >= 1
    return g


# ----------------------------------------------------------------------------
# Fused kernel: 4 bf16 GEMMs (f32 accumulate) + bias + ReLU; im2col patches
# assembled in-kernel from VMEM-resident activations, no intermediate stores.
# ----------------------------------------------------------------------------
def _make_kernel(g):
    C = g["C"]
    OH1, OW1 = g["OH1"], g["OW1"]
    OH2, OW2 = g["OH2"], g["OW2"]
    OH3, OW3 = g["OH3"], g["OW3"]
    HB2, WB2, P = g["HB2"], g["WB2"], g["P"]

    def kernel(x_ref, w1_ref, b1_ref, w2_ref, b2_ref, w3_ref, b3_ref,
               wh_ref, bh_ref, o_ref):
        f32, bf16 = jnp.float32, jnp.bfloat16
        Bb = x_ref.shape[0]
        M1 = Bb * OH1 * OW1
        M2 = Bb * OH2 * OW2
        M3 = Bb * OH3 * OW3

        # ------------------------------------------------------------------
        # Conv1 (8x8, stride 4): input packed as (Bb, H/4, W/4, 4*4*C), so
        # each of the 4 (dh, dk) window blocks is a contiguous slice.  One
        # K = 64*C GEMM, lane/row order (dh, dk, h%4, w%4, c).
        # ------------------------------------------------------------------
        pieces1 = []
        for dh in range(2):
            for dk in range(2):
                blk = x_ref[:, dh:dh + OH1, dk:dk + OW1, :]     # (Bb,OH1,OW1,16C)
                pieces1.append(blk.reshape(M1, 16 * C))
        lhs1 = jnp.concatenate(pieces1, axis=-1).astype(bf16)   # (M1, 64C)
        a1 = jnp.dot(lhs1, w1_ref[...], preferred_element_type=f32)
        a1 = jnp.maximum(a1 + b1_ref[...], 0.0)                 # (M1, 32) f32

        # Repack conv1 output into stride-2 blocks: (Bb, OH1/2, OW1/2, 128)
        # with 128 lanes ordered (h%2, w%2, c) -- exactly one conv2 lane group.
        a1_6 = a1.reshape(Bb, HB2, 2, WB2, 2, 32)
        a1p = jnp.concatenate(
            [a1_6[:, :, hs, :, ws, :] for hs in range(2) for ws in range(2)],
            axis=-1)                                            # (Bb,HB2,WB2,128)

        # ------------------------------------------------------------------
        # Conv2 (4x4, stride 2): K = 4*4*32 = 512 (no channel padding).
        # ------------------------------------------------------------------
        pieces2 = []
        for dh in range(2):
            for dk in range(2):
                blk = a1p[:, dh:dh + OH2, dk:dk + OW2, :]       # (Bb,OH2,OW2,128)
                pieces2.append(blk.reshape(M2, 128))
        lhs2 = jnp.concatenate(pieces2, axis=-1).astype(bf16)   # (M2, 512)
        a2 = jnp.dot(lhs2, w2_ref[...], preferred_element_type=f32)
        a2 = jnp.maximum(a2 + b2_ref[...], 0.0)                 # (M2, 64) f32

        # ------------------------------------------------------------------
        # Conv3 (3x3, stride 1): K = 3*3*64 = 576 (no channel padding).
        # ------------------------------------------------------------------
        a2_4 = a2.reshape(Bb, OH2, OW2, 64)
        pieces3 = []
        for kh in range(3):
            for kw in range(3):
                blk = a2_4[:, kh:kh + OH3, kw:kw + OW3, :]      # (Bb,OH3,OW3,64)
                pieces3.append(blk.reshape(M3, 64))
        lhs3 = jnp.concatenate(pieces3, axis=-1).astype(bf16)   # (M3, 576)
        a3 = jnp.dot(lhs3, w3_ref[...], preferred_element_type=f32)
        a3 = jnp.maximum(a3 + b3_ref[...], 0.0)                 # (M3, 64) f32

        # ------------------------------------------------------------------
        # Head.  wh was pre-permuted so our (p, c) flatten order reproduces
        # PyTorch's NCHW flatten bit-for-bit.
        # ------------------------------------------------------------------
        flat = a3.reshape(Bb, P * 64).astype(bf16)              # (Bb, feat)
        out = jnp.dot(flat, wh_ref[...], preferred_element_type=f32) + bh_ref[...]
        o_ref[...] = out.astype(o_ref.dtype)                    # lane-dense (Bb,128)

    return kernel


def make_ngu_rnd_forward(state_dim, latent_dim=128, batch_block=8):
    g = _geometry(state_dim)
    C, HB1, WB1 = g["C"], g["HB1"], g["WB1"]
    kernel = _make_kernel(g)

    @jax.jit
    def forward(prep, x_nchw):
        B = x_nchw.shape[0]
        Bb = batch_block if (B > batch_block and B % batch_block == 0) else B
        # NCHW -> (B, H/4, W/4, 4*4*C): one XLA repack so every in-kernel
        # conv1 window is a contiguous slice with (h%4, w%4, c) lane order.
        x = jnp.transpose(x_nchw, (0, 2, 3, 1)).astype(jnp.float32)
        xp = (x.reshape(B, HB1, 4, WB1, 4, C)
               .transpose(0, 1, 3, 2, 4, 5)
               .reshape(B, HB1, WB1, 16 * C))

        def full(a):
            return pl.BlockSpec(a.shape, lambda i: (0,) * a.ndim)

        return pl.pallas_call(
            kernel,
            out_shape=jax.ShapeDtypeStruct((B, latent_dim), jnp.float32),
            grid=(B // Bb,),
            in_specs=[
                pl.BlockSpec((Bb, HB1, WB1, 16 * C), lambda i: (i, 0, 0, 0)),
                full(prep["w1"]), full(prep["b1"]),
                full(prep["w2"]), full(prep["b2"]),
                full(prep["w3"]), full(prep["b3"]),
                full(prep["wh"]), full(prep["bh"]),
            ],
            out_specs=pl.BlockSpec((Bb, latent_dim), lambda i: (i, 0)),
            compiler_params=pltpu.CompilerParams(
                dimension_semantics=("parallel",)),
        )(xp, prep["w1"], prep["b1"], prep["w2"], prep["b2"],
          prep["w3"], prep["b3"], prep["wh"], prep["bh"])

    return forward


# ----------------------------------------------------------------------------
# Parameter handling: PyTorch-layout params -> GEMM-ready bf16 (done once).
# ----------------------------------------------------------------------------
def init_params(key, state_dim, latent_dim=128):
    """Deterministic synthetic init matching the PyTorch parameter shapes."""
    g = _geometry(state_dim)
    c = state_dim[0]
    feat = g["feat"]
    keys = jax.random.split(key, 8)

    def winit(k, shape, fan_in):
        return jax.random.normal(k, shape, jnp.float32) / jnp.sqrt(float(fan_in))

    params = {
        "conv1_w": winit(keys[0], (32, c, 8, 8), c * 64),
        "conv1_b": 0.01 * jax.random.normal(keys[1], (32,), jnp.float32),
        "conv2_w": winit(keys[2], (64, 32, 4, 4), 32 * 16),
        "conv2_b": 0.01 * jax.random.normal(keys[3], (64,), jnp.float32),
        "conv3_w": winit(keys[4], (64, 64, 3, 3), 64 * 9),
        "conv3_b": 0.01 * jax.random.normal(keys[5], (64,), jnp.float32),
        "head_w": winit(keys[6], (latent_dim, feat), feat),
        "head_b": 0.01 * jax.random.normal(keys[7], (latent_dim,), jnp.float32),
    }
    return params, feat


def prepare_params(p, state_dim, latent_dim=128):
    """One-time layout transform: bf16 GEMM weights with rows matching the
    kernel's (dh, dk, ...) window decomposition; biases stay f32."""
    g = _geometry(state_dim)
    C, P, L = g["C"], g["P"], latent_dim
    bf16, f32 = jnp.bfloat16, jnp.float32

    def conv1_w(w):  # (32, C, 8, 8) -> (64*C, 32), rows (dh, dk, h%4, w%4, c)
        wt = jnp.transpose(w, (2, 3, 1, 0))                       # (8, 8, C, 32)
        wt = wt.reshape(2, 4, 2, 4, C, 32).transpose(0, 2, 1, 3, 4, 5)
        return wt.reshape(64 * C, 32).astype(bf16)

    def conv2_w(w):  # (64, 32, 4, 4) -> (512, 64), rows (dh, dk, h%2, w%2, c)
        wt = jnp.transpose(w, (2, 3, 1, 0))                       # (4, 4, 32, 64)
        wt = wt.reshape(2, 2, 2, 2, 32, 64).transpose(0, 2, 1, 3, 4, 5)
        return wt.reshape(512, 64).astype(bf16)

    def conv3_w(w):  # (64, 64, 3, 3) -> (576, 64), rows (kh, kw, c)
        wt = jnp.transpose(w, (2, 3, 1, 0))                       # (3, 3, 64, 64)
        return wt.reshape(576, 64).astype(bf16)

    hw = (p["head_w"].reshape(L, 64, P).transpose(2, 1, 0)        # (P, 64, L)
          .reshape(P * 64, L).astype(bf16))
    return {
        "w1": conv1_w(p["conv1_w"]), "b1": p["conv1_b"].reshape(1, 32).astype(f32),
        "w2": conv2_w(p["conv2_w"]), "b2": p["conv2_b"].reshape(1, 64).astype(f32),
        "w3": conv3_w(p["conv3_w"]), "b3": p["conv3_b"].reshape(1, 64).astype(f32),
        "wh": hw, "bh": p["head_b"].reshape(1, L).astype(f32),
    }


# ----------------------------------------------------------------------------
# Plain-JAX f32 reference (pins the layout / flatten assumptions).
# ----------------------------------------------------------------------------
def reference_forward(params, x_nchw):
    def conv(x, w, b, s):
        y = jax.lax.conv_general_dilated(
            x, w, (s, s), "VALID", dimension_numbers=("NCHW", "OIHW", "NCHW"))
        return jax.nn.relu(y + b[None, :, None, None])

    x = x_nchw.astype(jnp.float32)
    x = conv(x, params["conv1_w"], params["conv1_b"], 4)
    x = conv(x, params["conv2_w"], params["conv2_b"], 2)
    x = conv(x, params["conv3_w"], params["conv3_b"], 1)
    flat = x.reshape(x.shape[0], -1)                       # NCHW flatten
    return flat @ params["head_w"].T + params["head_b"]


if __name__ == "__main__":
    state_dim = (4, 36, 36)   # (C, H, W): 36 -> 8 -> 3 -> 1 spatially
    latent_dim = 128
    batch = 2

    kp, kx = jax.random.split(jax.random.PRNGKey(0))
    params, feat = init_params(kp, state_dim, latent_dim)
    prep = prepare_params(params, state_dim, latent_dim)
    x = jax.random.normal(kx, (batch,) + state_dim, jnp.float32)

    forward = make_ngu_rnd_forward(state_dim, latent_dim)
    y = jax.block_until_ready(forward(prep, x))
    assert y.shape == (batch, latent_dim), y.shape
    assert y.dtype == jnp.float32

    y_ref = jax.block_until_ready(reference_forward(params, x))
    err = float(jnp.max(jnp.abs(y - y_ref)))
    assert bool(jnp.allclose(y, y_ref, atol=5e-2, rtol=5e-2)), (
        "max abs diff %.4e" % err)
    print("KERNEL_OK")
</pallas_src>

<mosaic_0001>
module attributes {stable_mosaic.version = 11 : i64} {
  func.func @kernel(%arg0: i32, %arg1: memref<2x9x9x64xf32, #tpu.memory_space<vmem>>, %arg2: memref<256x32xbf16, #tpu.memory_space<vmem>>, %arg3: memref<1x32xf32, #tpu.memory_space<vmem>>, %arg4: memref<512x64xbf16, #tpu.memory_space<vmem>>, %arg5: memref<1x64xf32, #tpu.memory_space<vmem>>, %arg6: memref<576x64xbf16, #tpu.memory_space<vmem>>, %arg7: memref<1x64xf32, #tpu.memory_space<vmem>>, %arg8: memref<64x128xbf16, #tpu.memory_space<vmem>>, %arg9: memref<1x128xf32, #tpu.memory_space<vmem>>, %arg10: memref<2x128xf32, #tpu.memory_space<vmem>>) attributes {dimension_semantics = [#tpu.dimension_semantics<parallel>], iteration_bounds = array<i64: 1>, scalar_prefetch = 0 : i64, scratch_operands = 0 : i64, tpu.core_type = #tpu.core_type<tc>, window_params = [{transform_indices = @transform_0, window_bounds = array<i64: 2, 9, 9, 64>}, {pipeline_mode = #tpu.pipeline_mode<synchronous>, transform_indices = @transform_1, window_bounds = array<i64: 256, 32>}, {pipeline_mode = #tpu.pipeline_mode<synchronous>, transform_indices = @transform_2, window_bounds = array<i64: 1, 32>}, {pipeline_mode = #tpu.pipeline_mode<synchronous>, transform_indices = @transform_3, window_bounds = array<i64: 512, 64>}, {pipeline_mode = #tpu.pipeline_mode<synchronous>, transform_indices = @transform_4, window_bounds = array<i64: 1, 64>}, {pipeline_mode = #tpu.pipeline_mode<synchronous>, transform_indices = @transform_5, window_bounds = array<i64: 576, 64>}, {pipeline_mode = #tpu.pipeline_mode<synchronous>, transform_indices = @transform_6, window_bounds = array<i64: 1, 64>}, {pipeline_mode = #tpu.pipeline_mode<synchronous>, transform_indices = @transform_7, window_bounds = array<i64: 64, 128>}, {pipeline_mode = #tpu.pipeline_mode<synchronous>, transform_indices = @transform_8, window_bounds = array<i64: 1, 128>}, {transform_indices = @transform_9, window_bounds = array<i64: 2, 128>}]} {
    %c0 = arith.constant 0 : index
    %c0_0 = arith.constant 0 : index
    %c0_1 = arith.constant 0 : index
    %c0_2 = arith.constant 0 : index
    %0 = vector.load %arg1[%c0, %c0_0, %c0_1, %c0_2] : memref<2x9x9x64xf32, #tpu.memory_space<vmem>>, vector<2x8x8x64xf32>
    %1 = vector.shape_cast %0 : vector<2x8x8x64xf32> to vector<128x64xf32>
    %c0_3 = arith.constant 0 : index
    %c0_4 = arith.constant 0 : index
    %c1 = arith.constant 1 : index
    %c0_5 = arith.constant 0 : index
    %2 = vector.load %arg1[%c0_3, %c0_4, %c1, %c0_5] : memref<2x9x9x64xf32, #tpu.memory_space<vmem>>, vector<2x8x8x64xf32>
    %3 = vector.shape_cast %2 : vector<2x8x8x64xf32> to vector<128x64xf32>
    %c0_6 = arith.constant 0 : index
    %c1_7 = arith.constant 1 : index
    %c0_8 = arith.constant 0 : index
    %c0_9 = arith.constant 0 : index
    %4 = vector.load %arg1[%c0_6, %c1_7, %c0_8, %c0_9] : memref<2x9x9x64xf32, #tpu.memory_space<vmem>>, vector<2x8x8x64xf32>
    %5 = vector.shape_cast %4 : vector<2x8x8x64xf32> to vector<128x64xf32>
    %c0_10 = arith.constant 0 : index
    %c1_11 = arith.constant 1 : index
    %c1_12 = arith.constant 1 : index
    %c0_13 = arith.constant 0 : index
    %6 = vector.load %arg1[%c0_10, %c1_11, %c1_12, %c0_13] : memref<2x9x9x64xf32, #tpu.memory_space<vmem>>, vector<2x8x8x64xf32>
    %7 = vector.shape_cast %6 : vector<2x8x8x64xf32> to vector<128x64xf32>
    %8 = tpu.concatenate %1, %3, %5, %7 in 1 : vector<128x64xf32>, vector<128x64xf32>, vector<128x64xf32>, vector<128x64xf32> -> vector<128x256xf32>
    %9 = arith.truncf %8 : vector<128x256xf32> to vector<128x256xbf16>
    %c0_14 = arith.constant 0 : index
    %c0_15 = arith.constant 0 : index
    %10 = vector.load %arg2[%c0_14, %c0_15] : memref<256x32xbf16, #tpu.memory_space<vmem>>, vector<256x32xbf16>
    %cst = arith.constant dense<0.000000e+00> : vector<128x32xf32>
    %11 = tpu.matmul %9, %10, %cst {dimension_numbers = #tpu.dot_dimension_numbers<[1], [0], [0], [1], [0, 0, 1, 1], [], []>} : vector<128x256xbf16>, vector<256x32xbf16>, vector<128x32xf32> -> vector<128x32xf32>
    %c0_16 = arith.constant 0 : index
    %c0_17 = arith.constant 0 : index
    %12 = vector.load %arg3[%c0_16, %c0_17] : memref<1x32xf32, #tpu.memory_space<vmem>>, vector<1x32xf32>
    %13 = vector.broadcast %12 : vector<1x32xf32> to vector<128x32xf32>
    %14 = arith.addf %11, %13 : vector<128x32xf32>
    %cst_18 = arith.constant 0.000000e+00 : f32
    %15 = vector.broadcast %cst_18 : f32 to vector<128x32xf32>
    %16 = arith.maximumf %14, %15 : vector<128x32xf32>
    %17 = vector.shape_cast %16 : vector<128x32xf32> to vector<2x4x2x4x2x32xf32>
    %18 = vector.extract_strided_slice %17 {offsets = [0, 0, 0, 0, 0, 0], sizes = [2, 4, 1, 4, 1, 32], strides = [1, 1, 1, 1, 1, 1]} : vector<2x4x2x4x2x32xf32> to vector<2x4x1x4x1x32xf32>
    %19 = vector.shape_cast %18 : vector<2x4x1x4x1x32xf32> to vector<2x4x4x32xf32>
    %20 = vector.extract_strided_slice %17 {offsets = [0, 0, 0, 0, 1, 0], sizes = [2, 4, 1, 4, 1, 32], strides = [1, 1, 1, 1, 1, 1]} : vector<2x4x2x4x2x32xf32> to vector<2x4x1x4x1x32xf32>
    %21 = vector.shape_cast %20 : vector<2x4x1x4x1x32xf32> to vector<2x4x4x32xf32>
    %22 = vector.extract_strided_slice %17 {offsets = [0, 0, 1, 0, 0, 0], sizes = [2, 4, 1, 4, 1, 32], strides = [1, 1, 1, 1, 1, 1]} : vector<2x4x2x4x2x32xf32> to vector<2x4x1x4x1x32xf32>
    %23 = vector.shape_cast %22 : vector<2x4x1x4x1x32xf32> to vector<2x4x4x32xf32>
    %24 = vector.extract_strided_slice %17 {offsets = [0, 0, 1, 0, 1, 0], sizes = [2, 4, 1, 4, 1, 32], strides = [1, 1, 1, 1, 1, 1]} : vector<2x4x2x4x2x32xf32> to vector<2x4x1x4x1x32xf32>
    %25 = vector.shape_cast %24 : vector<2x4x1x4x1x32xf32> to vector<2x4x4x32xf32>
    %26 = tpu.concatenate %19, %21, %23, %25 in 3 : vector<2x4x4x32xf32>, vector<2x4x4x32xf32>, vector<2x4x4x32xf32>, vector<2x4x4x32xf32> -> vector<2x4x4x128xf32>
    %27 = vector.extract_strided_slice %26 {offsets = [0, 0, 0, 0], sizes = [2, 3, 3, 128], strides = [1, 1, 1, 1]} : vector<2x4x4x128xf32> to vector<2x3x3x128xf32>
    %28 = vector.shape_cast %27 : vector<2x3x3x128xf32> to vector<18x128xf32>
    %29 = vector.extract_strided_slice %26 {offsets = [0, 0, 1, 0], sizes = [2, 3, 3, 128], strides = [1, 1, 1, 1]} : vector<2x4x4x128xf32> to vector<2x3x3x128xf32>
    %30 = vector.shape_cast %29 : vector<2x3x3x128xf32> to vector<18x128xf32>
    %31 = vector.extract_strided_slice %26 {offsets = [0, 1, 0, 0], sizes = [2, 3, 3, 128], strides = [1, 1, 1, 1]} : vector<2x4x4x128xf32> to vector<2x3x3x128xf32>
    %32 = vector.shape_cast %31 : vector<2x3x3x128xf32> to vector<18x128xf32>
    %33 = vector.extract_strided_slice %26 {offsets = [0, 1, 1, 0], sizes = [2, 3, 3, 128], strides = [1, 1, 1, 1]} : vector<2x4x4x128xf32> to vector<2x3x3x128xf32>
    %34 = vector.shape_cast %33 : vector<2x3x3x128xf32> to vector<18x128xf32>
    %35 = tpu.concatenate %28, %30, %32, %34 in 1 : vector<18x128xf32>, vector<18x128xf32>, vector<18x128xf32>, vector<18x128xf32> -> vector<18x512xf32>
    %36 = arith.truncf %35 : vector<18x512xf32> to vector<18x512xbf16>
    %c0_19 = arith.constant 0 : index
    %c0_20 = arith.constant 0 : index
    %37 = vector.load %arg4[%c0_19, %c0_20] : memref<512x64xbf16, #tpu.memory_space<vmem>>, vector<512x64xbf16>
    %cst_21 = arith.constant dense<0.000000e+00> : vector<18x64xf32>
    %38 = tpu.matmul %36, %37, %cst_21 {dimension_numbers = #tpu.dot_dimension_numbers<[1], [0], [0], [1], [0, 0, 1, 1], [], []>} : vector<18x512xbf16>, vector<512x64xbf16>, vector<18x64xf32> -> vector<18x64xf32>
    %c0_22 = arith.constant 0 : index
    %c0_23 = arith.constant 0 : index
    %39 = vector.load %arg5[%c0_22, %c0_23] : memref<1x64xf32, #tpu.memory_space<vmem>>, vector<1x64xf32>
    %40 = vector.broadcast %39 : vector<1x64xf32> to vector<18x64xf32>
    %41 = arith.addf %38, %40 : vector<18x64xf32>
    %cst_24 = arith.constant 0.000000e+00 : f32
    %42 = vector.broadcast %cst_24 : f32 to vector<18x64xf32>
    %43 = arith.maximumf %41, %42 : vector<18x64xf32>
    %44 = vector.shape_cast %43 : vector<18x64xf32> to vector<2x3x3x64xf32>
    %45 = vector.extract_strided_slice %44 {offsets = [0, 0, 0, 0], sizes = [2, 1, 1, 64], strides = [1, 1, 1, 1]} : vector<2x3x3x64xf32> to vector<2x1x1x64xf32>
    %46 = vector.shape_cast %45 : vector<2x1x1x64xf32> to vector<2x64xf32>
    %47 = vector.extract_strided_slice %44 {offsets = [0, 0, 1, 0], sizes = [2, 1, 1, 64], strides = [1, 1, 1, 1]} : vector<2x3x3x64xf32> to vector<2x1x1x64xf32>
    %48 = vector.shape_cast %47 : vector<2x1x1x64xf32> to vector<2x64xf32>
    %49 = vector.extract_strided_slice %44 {offsets = [0, 0, 2, 0], sizes = [2, 1, 1, 64], strides = [1, 1, 1, 1]} : vector<2x3x3x64xf32> to vector<2x1x1x64xf32>
    %50 = vector.shape_cast %49 : vector<2x1x1x64xf32> to vector<2x64xf32>
    %51 = vector.extract_strided_slice %44 {offsets = [0, 1, 0, 0], sizes = [2, 1, 1, 64], strides = [1, 1, 1, 1]} : vector<2x3x3x64xf32> to vector<2x1x1x64xf32>
    %52 = vector.shape_cast %51 : vector<2x1x1x64xf32> to vector<2x64xf32>
    %53 = vector.extract_strided_slice %44 {offsets = [0, 1, 1, 0], sizes = [2, 1, 1, 64], strides = [1, 1, 1, 1]} : vector<2x3x3x64xf32> to vector<2x1x1x64xf32>
    %54 = vector.shape_cast %53 : vector<2x1x1x64xf32> to vector<2x64xf32>
    %55 = vector.extract_strided_slice %44 {offsets = [0, 1, 2, 0], sizes = [2, 1, 1, 64], strides = [1, 1, 1, 1]} : vector<2x3x3x64xf32> to vector<2x1x1x64xf32>
    %56 = vector.shape_cast %55 : vector<2x1x1x64xf32> to vector<2x64xf32>
    %57 = vector.extract_strided_slice %44 {offsets = [0, 2, 0, 0], sizes = [2, 1, 1, 64], strides = [1, 1, 1, 1]} : vector<2x3x3x64xf32> to vector<2x1x1x64xf32>
    %58 = vector.shape_cast %57 : vector<2x1x1x64xf32> to vector<2x64xf32>
    %59 = vector.extract_strided_slice %44 {offsets = [0, 2, 1, 0], sizes = [2, 1, 1, 64], strides = [1, 1, 1, 1]} : vector<2x3x3x64xf32> to vector<2x1x1x64xf32>
    %60 = vector.shape_cast %59 : vector<2x1x1x64xf32> to vector<2x64xf32>
    %61 = vector.extract_strided_slice %44 {offsets = [0, 2, 2, 0], sizes = [2, 1, 1, 64], strides = [1, 1, 1, 1]} : vector<2x3x3x64xf32> to vector<2x1x1x64xf32>
    %62 = vector.shape_cast %61 : vector<2x1x1x64xf32> to vector<2x64xf32>
    %63 = tpu.concatenate %46, %48, %50, %52, %54, %56, %58, %60, %62 in 1 : vector<2x64xf32>, vector<2x64xf32>, vector<2x64xf32>, vector<2x64xf32>, vector<2x64xf32>, vector<2x64xf32>, vector<2x64xf32>, vector<2x64xf32>, vector<2x64xf32> -> vector<2x576xf32>
    %64 = arith.truncf %63 : vector<2x576xf32> to vector<2x576xbf16>
    %c0_25 = arith.constant 0 : index
    %c0_26 = arith.constant 0 : index
    %65 = vector.load %arg6[%c0_25, %c0_26] : memref<576x64xbf16, #tpu.memory_space<vmem>>, vector<576x64xbf16>
    %cst_27 = arith.constant dense<0.000000e+00> : vector<2x64xf32>
    %66 = tpu.matmul %64, %65, %cst_27 {dimension_numbers = #tpu.dot_dimension_numbers<[1], [0], [0], [1], [0, 0, 1, 1], [], []>} : vector<2x576xbf16>, vector<576x64xbf16>, vector<2x64xf32> -> vector<2x64xf32>
    %c0_28 = arith.constant 0 : index
    %c0_29 = arith.constant 0 : index
    %67 = vector.load %arg7[%c0_28, %c0_29] : memref<1x64xf32, #tpu.memory_space<vmem>>, vector<1x64xf32>
    %68 = vector.broadcast %67 : vector<1x64xf32> to vector<2x64xf32>
    %69 = arith.addf %66, %68 : vector<2x64xf32>
    %cst_30 = arith.constant 0.000000e+00 : f32
    %70 = vector.broadcast %cst_30 : f32 to vector<2x64xf32>
    %71 = arith.maximumf %69, %70 : vector<2x64xf32>
    %72 = arith.truncf %71 : vector<2x64xf32> to vector<2x64xbf16>
    %c0_31 = arith.constant 0 : index
    %c0_32 = arith.constant 0 : index
    %73 = vector.load %arg8[%c0_31, %c0_32] : memref<64x128xbf16, #tpu.memory_space<vmem>>, vector<64x128xbf16>
    %cst_33 = arith.constant dense<0.000000e+00> : vector<2x128xf32>
    %74 = tpu.matmul %72, %73, %cst_33 {dimension_numbers = #tpu.dot_dimension_numbers<[1], [0], [0], [1], [0, 0, 1, 1], [], []>} : vector<2x64xbf16>, vector<64x128xbf16>, vector<2x128xf32> -> vector<2x128xf32>
    %c0_34 = arith.constant 0 : index
    %c0_35 = arith.constant 0 : index
    %75 = vector.load %arg9[%c0_34, %c0_35] : memref<1x128xf32, #tpu.memory_space<vmem>>, vector<1x128xf32>
    %76 = vector.broadcast %75 : vector<1x128xf32> to vector<2x128xf32>
    %77 = arith.addf %74, %76 : vector<2x128xf32>
    %c0_36 = arith.constant 0 : index
    %c0_37 = arith.constant 0 : index
    %78 = vector.load %arg10[%c0_36, %c0_37] : memref<2x128xf32, #tpu.memory_space<vmem>>, vector<2x128xf32>
    tpu.vector_store %arg10[%c0_36, %c0_37], %77 {strides = array<i32>} : memref<2x128xf32, #tpu.memory_space<vmem>>, vector<2x128xf32>,
    return
  }
  func.func @transform_0(%arg0: i32) -> (i32, i32, i32, i32) {
    %c0_i32 = arith.constant 0 : i32
    %c0_i32_0 = arith.constant 0 : i32
    %c0_i32_1 = arith.constant 0 : i32
    %c0_i32_2 = arith.constant 0 : i32
    return %arg0, %c0_i32, %c0_i32_0, %c0_i32_1 : i32, i32, i32, i32
  }
  func.func @transform_1(%arg0: i32) -> (i32, i32) {
    %c0_i32 = arith.constant 0 : i32
    %c0_i32_0 = arith.constant 0 : i32
    %c0_i32_1 = arith.constant 0 : i32
    return %c0_i32, %c0_i32_0 : i32, i32
  }
  func.func @transform_2(%arg0: i32) -> (i32, i32) {
    %c0_i32 = arith.constant 0 : i32
    %c0_i32_0 = arith.constant 0 : i32
    %c0_i32_1 = arith.constant 0 : i32
    return %c0_i32, %c0_i32_0 : i32, i32
  }
  func.func @transform_3(%arg0: i32) -> (i32, i32) {
    %c0_i32 = arith.constant 0 : i32
    %c0_i32_0 = arith.constant 0 : i32
    %c0_i32_1 = arith.constant 0 : i32
    return %c0_i32, %c0_i32_0 : i32, i32
  }
  func.func @transform_4(%arg0: i32) -> (i32, i32) {
    %c0_i32 = arith.constant 0 : i32
    %c0_i32_0 = arith.constant 0 : i32
    %c0_i32_1 = arith.constant 0 : i32
    return %c0_i32, %c0_i32_0 : i32, i32
  }
  func.func @transform_5(%arg0: i32) -> (i32, i32) {
    %c0_i32 = arith.constant 0 : i32
    %c0_i32_0 = arith.constant 0 : i32
    %c0_i32_1 = arith.constant 0 : i32
    return %c0_i32, %c0_i32_0 : i32, i32
  }
  func.func @transform_6(%arg0: i32) -> (i32, i32) {
    %c0_i32 = arith.constant 0 : i32
    %c0_i32_0 = arith.constant 0 : i32
    %c0_i32_1 = arith.constant 0 : i32
    return %c0_i32, %c0_i32_0 : i32, i32
  }
  func.func @transform_7(%arg0: i32) -> (i32, i32) {
    %c0_i32 = arith.constant 0 : i32
    %c0_i32_0 = arith.constant 0 : i32
    %c0_i32_1 = arith.constant 0 : i32
    return %c0_i32, %c0_i32_0 : i32, i32
  }
  func.func @transform_8(%arg0: i32) -> (i32, i32) {
    %c0_i32 = arith.constant 0 : i32
    %c0_i32_0 = arith.constant 0 : i32
    %c0_i32_1 = arith.constant 0 : i32
    return %c0_i32, %c0_i32_0 : i32, i32
  }
  func.func @transform_9(%arg0: i32) -> (i32, i32) {
    %c0_i32 = arith.constant 0 : i32
    %c0_i32_0 = arith.constant 0 : i32
    return %arg0, %c0_i32 : i32, i32
  }
}

</mosaic_0001>

<bundles_post_ra>
// kernel: forward.1
= control target key start
LH: loop header
LB: loop body
LE: loop exit
PB: predicated region body
PF: predicated region fallthrough
CT: control target
= control target key end

     0   :  { %s3872_s19 = smov 64   ;;  %s5220_s0 = inlined_call_operand.vmem [shape: f32[2,9,9,64], index: 0, kind: input, shape index: {}]   ;;  %s5221_s1 = inlined_call_operand.vmem [shape: bf16[256,32], index: 1, kind: input, shape index: {}]   ;;  %s5222_s2 = inlined_call_operand.vmem [shape: f32[1,32], index: 2, kind: input, shape index: {}]   ;;  %s5223_s3 = inlined_call_operand.vmem [shape: bf16[512,64], index: 3, kind: input, shape index: {}]   ;;  %s5224_s4 = inlined_call_operand.vmem [shape: f32[1,64], index: 4, kind: input, shape index: {}]   ;;  %s5225_s5 = inlined_call_operand.vmem [shape: bf16[576,64], index: 5, kind: input, shape index: {}]   ;;  %s5226_s6 = inlined_call_operand.vmem [shape: f32[1,64], index: 6, kind: input, shape index: {}]   ;;  %s5227_s7 = inlined_call_operand.vmem [shape: bf16[64,128], index: 7, kind: input, shape index: {}]   ;;  %s5228_s8 = inlined_call_operand.vmem [shape: f32[1,128], index: 8, kind: input, shape index: {}]   ;;  %s5229_s9 = inlined_call_operand.hbm [shape: f32[2,128], index: 9, kind: output, shape index: {}]  }
   0x1   :  { %v3348_v0 = vld [vmem:[%s5220_s0 + $0x11] sm:$0xff]  ;;  %v3349_v1 = vld [vmem:[%s5220_s0 + $0x21] sm:$0xff] }
   0x2   :  { %v50_v2 = vld [vmem:[%s5220_s0 + $0x1] sm:$0xff]  ;;  %v3672_v3 = vpack.i.bf16 %v3349_v1, %v3348_v0  ;;  %v3350_v4 = vld [vmem:[%s5220_s0 + $0x31] sm:$0xff] }
   0x3   :  { %v3351_v5 = vld [vmem:[%s5220_s0 + $0x41] sm:$0xff]  ;;  %v3677_v7 = vpack.i.bf16 %v3348_v0, %v50_v2  ;;  %v3687_v8 = vpack.i.bf16 %v3350_v4, %v3349_v1  ;;  %v3352_v9 = vld [vmem:[%s5220_s0 + $0x51] sm:$0xff] }
   0x4   :  { %v3682_v6 = vpack.i.bf16 %v3351_v5, %v3350_v4  ;;  %3673 = vrot.lane.b32.xlu0 %v3672_v3, %s3872_s19  ;;  %v3353_v10 = vld [vmem:[%s5220_s0 + $0x61] sm:$0xff]  ;;  %v3354_v11 = vld [vmem:[%s5220_s0 + $0x71] sm:$0xff]  ;;  %v3697_v16 = vpack.i.bf16 %v3352_v9, %v3351_v5 }
   0x5   :  { %v3355_v12 = vld [vmem:[%s5220_s0 + $0x81] sm:$0xff]  ;;  %v3762_v13 = vld [vmem:[%s5221_s1 + $0x78] sm:$0xff]   ;;  %v3692_v14 = vpack.i.bf16 %v3353_v10, %v3352_v9  ;;  %v3764_v17 = vld [vmem:[%s5221_s1 + $0x70] sm:$0xff]   ;;  %v3707_v23 = vpack.i.bf16 %v3354_v11, %v3353_v10 }
   0x6   :  { %3683 = vrot.lane.b32.xlu1 %v3682_v6, %s3872_s19  ;;  %v3763_v15 = vld [vmem:[%s5221_s1 + $0x38] sm:$0xff]   ;;  %3466 = vmatprep.subr.bf16.mxu0 %v3762_v13  ;;  %v3765_v18 = vld [vmem:[%s5221_s1 + $0x30] sm:$0xff]   ;;  %v3356_v19 = vld [vmem:[%s5220_s0 + $0xa1] sm:$0xff]  ;;  %v3702_v21 = vpack.i.bf16 %v3355_v12, %v3354_v11 }
   0x7   :  { %3467 = vmatpush3.bf16.msra.mxu0 %v3763_v15  ;;  %v3766_v20 = vld [vmem:[%s5221_s1 + $0x68] sm:$0xff]   ;;  %v3357_v22 = vld [vmem:[%s5220_s0 + $0xb1] sm:$0xff]  ;;  %v3768_v26 = vld [vmem:[%s5221_s1 + $0x60] sm:$0xff]  }
   0x8   :  { %3678 = vrot.lane.b32.xlu0 %v3677_v7, %s3872_s19  ;;  %3468 = vmatprep.subr.bf16.mxu0 %v3764_v17  ;;  %v58_v24 = vld [vmem:[%s5220_s0 + $0x91] sm:$0xff]  ;;  %v3767_v25 = vld [vmem:[%s5221_s1 + $0x28] sm:$0xff]   ;;  %v3712_v27 = vpack.i.bf16 %v3357_v22, %v3356_v19  ;;  %v3769_v31 = vld [vmem:[%s5221_s1 + $0x20] sm:$0xff]  }
   0x9   :  { %v3358_v28 = vld [vmem:[%s5220_s0 + $0xc1] sm:$0xff]  ;;  %v3717_v29 = vpack.i.bf16 %v3356_v19, %v58_v24  ;;  %v3359_v30 = vld [vmem:[%s5220_s0 + $0xd1] sm:$0xff] }
   0xa   :  { %3688 = vrot.lane.b32.xlu1 %v3687_v8, %s3872_s19  ;;  %v3770_v32 = vld [vmem:[%s5221_s1 + $0x58] sm:$0xff]   ;;  %v3722_v33 = vpack.i.bf16 %v3359_v30, %v3358_v28  ;;  %v3360_v34 = vld [vmem:[%s5220_s0 + $0xe1] sm:$0xff]  ;;  %v3727_v35 = vpack.i.bf16 %v3358_v28, %v3357_v22  ;;  %v3772_v38 = vld [vmem:[%s5221_s1 + $0x50] sm:$0xff]  }
   0xb   :  { %3469 = vmatpush3.bf16.msra.mxu0 %v3765_v18  ;;  %v3361_v36 = vld [vmem:[%s5220_s0 + $0xf1] sm:$0xff]  ;;  %v3737_v40 = vpack.i.bf16 %v3360_v34, %v3359_v30  ;;  %v3362_v41 = vld [vmem:[%s5220_s0 + $0x101] sm:$0xff] }
   0xc   :  { %3693 = vrot.lane.b32.xlu0 %v3692_v14, %s3872_s19  ;;  %3470 = vmatprep.subr.bf16.mxu0 %v3766_v20  ;;  %v3771_v37 = vld [vmem:[%s5221_s1 + $0x18] sm:$0xff]   ;;  %v3732_v39 = vpack.i.bf16 %v3361_v36, %v3360_v34  ;;  %v3773_v43 = vld [vmem:[%s5221_s1 + $0x10] sm:$0xff]   ;;  %v3774_v44 = vld [vmem:[%s5221_s1 + $0x48] sm:$0xff]   ;;  %v3747_v47 = vpack.i.bf16 %v3362_v41, %v3361_v36 }
   0xd   :  { %v3363_v42 = vld [vmem:[%s5220_s0 + $0x111] sm:$0xff]  ;;  %v3775_v46 = vld [vmem:[%s5221_s1 + $0x8] sm:$0xff]   ;;  %v3776_v48 = vld [vmem:[%s5221_s1 + $0x40] sm:$0xff]  }
   0xe   :  { %3698 = vrot.lane.b32.xlu1 %v3697_v16, %s3872_s19  ;;  %v3742_v45 = vpack.i.bf16 %v3363_v42, %v3362_v41  ;;  %v3777_v49 = vld [vmem:[%s5221_s1] sm:$0xff]  }
   0xf   :  { %3471 = vmatpush3.bf16.msra.mxu0 %v3767_v25 }
  0x10   :  { %3703 = vrot.lane.b32.xlu0 %v3702_v21, %s3872_s19  ;;  %3472 = vmatprep.subr.bf16.mxu0 %v3768_v26 }
  0x12   :  { %3708 = vrot.lane.b32.xlu1 %v3707_v23, %s3872_s19 }
  0x13   :  { %3473 = vmatpush3.bf16.msra.mxu0 %v3769_v31 }
  0x14   :  { %3713 = vrot.lane.b32.xlu0 %v3712_v27, %s3872_s19  ;;  %3474 = vmatprep.subr.bf16.mxu0 %v3770_v32 }
  0x16   :  { %3718 = vrot.lane.b32.xlu1 %v3717_v29, %s3872_s19 }
  0x17   :  { %3475 = vmatpush3.bf16.msra.mxu0 %v3771_v37 }
  0x18   :  { %3723 = vrot.lane.b32.xlu0 %v3722_v33, %s3872_s19  ;;  %3476 = vmatprep.subr.bf16.mxu0 %v3772_v38 }
  0x1a   :  { %3728 = vrot.lane.b32.xlu1 %v3727_v35, %s3872_s19 }
  0x1b   :  { %3477 = vmatpush3.bf16.msra.mxu0 %v3773_v43 }
  0x1c   :  { %3733 = vrot.lane.b32.xlu0 %v3732_v39, %s3872_s19  ;;  %3478 = vmatprep.subr.bf16.mxu0 %v3774_v44 }
  0x1e   :  { %3738 = vrot.lane.b32.xlu1 %v3737_v40, %s3872_s19 }
  0x1f   :  { %3479 = vmatpush3.bf16.msra.mxu0 %v3775_v46 }
  0x20   :  { %3743 = vrot.lane.b32.xlu0 %v3742_v45, %s3872_s19  ;;  %3480 = vmatprep.subr.bf16.mxu0 %v3776_v48 }
  0x22   :  { %3748 = vrot.lane.b32.xlu1 %v3747_v47, %s3872_s19 }
  0x23   :  { %3481 = vmatpush3.bf16.msra.mxu0 %v3777_v49 }
  0x24   :  { %14 = vsyncpa [#allocation3], 0  ;;  %v3332_v51 = vld [vmem:[%s5220_s0 + $0x10] sm:$0xff]  ;;  %v3333_v52 = vld [vmem:[%s5220_s0 + $0x20] sm:$0xff]  ;;  %vm227_vm0 = vcmask 523264   ;;  %vm940_vm1 = vcmask 1041409  }
  0x25   :  { %v3334_v56 = vld [vmem:[%s5220_s0 + $0x30] sm:$0xff]  ;;  %v3335_v57 = vld [vmem:[%s5220_s0 + $0x40] sm:$0xff]  ;;  %vm942_vm2 = vcmask 1042434   ;;  %vm944_vm3 = vcmask 1043459   ;;  %s3875_s12 = smov 96   ;;  %vm1503_vm4 = vcmask 261120  }
  0x26   :  { %v34_v0 = vld [vmem:[%s5220_s0] sm:$0xff]  ;;  %v3336_v15 = vld [vmem:[%s5220_s0 + $0x50] sm:$0xff]  ;;  %vm1520_vm5 = vcmask 785408   ;;  %vm3878_vm6 = vmmov 0  }
  0x27   :  { %v3337_v16 = vld [vmem:[%s5220_s0 + $0x60] sm:$0xff]  ;;  %v3338_v29 = vld [vmem:[%s5220_s0 + $0x70] sm:$0xff] }
  0x28   :  { %v3339_v30 = vld [vmem:[%s5220_s0 + $0x80] sm:$0xff]  ;;  %v3341_v44 = vld [vmem:[%s5220_s0 + $0xb0] sm:$0xff] }
  0x29   :  { %v3340_v43 = vld [vmem:[%s5220_s0 + $0xa0] sm:$0xff] }
  0x76   :  { %v3674_v50 = vpop.permute.xlu0 %3673 }
  0x77   :  { %v3676_v53 = vunpack.i.h.bf16 %v3674_v50  ;;  %v3675_v54 = vunpack.i.l.bf16 %v3674_v50 }
  0x78   :  { %v3684_v55 = vpop.permute.xlu1 %3683 }
  0x79   :  { %v3686_v58 = vunpack.i.h.bf16 %v3684_v55  ;;  %v3685_v59 = vunpack.i.l.bf16 %v3684_v55  ;;  %v244_v60 = vsel %vm227_vm0, %v3332_v51, %v3675_v54  ;;  %v245_v61 = vsel %vm227_vm0, %v3333_v52, %v3676_v53  ;;  %v42_v55 = vld [vmem:[%s5220_s0 + $0x90] sm:$0xff] }
  0x7a   :  { %v3679_v62 = vpop.permute.xlu0 %3678  ;;  %v261_v63 = vpack.c.bf16 %v245_v61, %v244_v60 }
  0x7b   :  { %v246_v1 = vsel %vm227_vm0, %v3334_v56, %v3685_v59  ;;  %v247_v2 = vsel %vm227_vm0, %v3335_v57, %v3686_v58  ;;  %v3681_v3 = vunpack.i.h.bf16 %v3679_v62  ;;  %v3680_v4 = vunpack.i.l.bf16 %v3679_v62  ;;  %v3342_v58 = vld [vmem:[%s5220_s0 + $0xc0] sm:$0xff]  ;;  %v3343_v59 = vld [vmem:[%s5220_s0 + $0xd0] sm:$0xff] }
  0x7c   :  { %v3689_v5 = vpop.permute.xlu1 %3688  ;;  %443 = vmatprep.mubr.bf16.mxu0 %v261_v63  ;;  %v263_v6 = vpack.c.bf16 %v247_v2, %v246_v1 }
  0x7d   :  { %v228_v7 = vsel %vm227_vm0, %v34_v0, %v3680_v4  ;;  %v229_v8 = vsel %vm227_vm0, %v3332_v51, %v3681_v3  ;;  %v3691_v9 = vunpack.i.h.bf16 %v3689_v5  ;;  %v3690_v10 = vunpack.i.l.bf16 %v3689_v5 }
  0x7e   :  { %v260_v11 = vpack.c.bf16 %v229_v8, %v228_v7  ;;  %v3694_v12 = vpop.permute.xlu0 %3693  ;;  %v3344_v8 = vld [vmem:[%s5220_s0 + $0xe0] sm:$0xff] }
  0x7f   :  { %v3696_v13 = vunpack.i.h.bf16 %v3694_v12  ;;  %v3695_v14 = vunpack.i.l.bf16 %v3694_v12  ;;  %v230_v17 = vsel %vm227_vm0, %v3333_v52, %v3690_v10  ;;  %v231_v18 = vsel %vm227_vm0, %v3334_v56, %v3691_v9  ;;  %v3345_v9 = vld [vmem:[%s5220_s0 + $0xf0] sm:$0xff] }
  0x80   :  { %444 = vmatmul.mubr.bf16.vlgmr.msra.gmra.mxu0 %v260_v11  ;;  %v3699_v19 = vpop.permute.xlu1 %3698  ;;  %v262_v23 = vpack.c.bf16 %v231_v18, %v230_v17 }
  0x81   :  { %451 = vmatprep.mubr.bf16.mxu0 %v263_v6  ;;  %v248_v20 = vsel %vm227_vm0, %v3336_v15, %v3695_v14  ;;  %v249_v21 = vsel %vm227_vm0, %v3337_v16, %v3696_v13  ;;  %v3701_v24 = vunpack.i.h.bf16 %v3699_v19  ;;  %v3700_v25 = vunpack.i.l.bf16 %v3699_v19 }
  0x82   :  { %v3704_v22 = vpop.permute.xlu0 %3703  ;;  %v265_v26 = vpack.c.bf16 %v249_v21, %v248_v20 }
  0x83   :  { %v3706_v27 = vunpack.i.h.bf16 %v3704_v22  ;;  %v3705_v28 = vunpack.i.l.bf16 %v3704_v22  ;;  %v232_v31 = vsel %vm227_vm0, %v3335_v57, %v3700_v25  ;;  %v233_v32 = vsel %vm227_vm0, %v3336_v15, %v3701_v24  ;;  %v3346_v22 = vld [vmem:[%s5220_s0 + $0x100] sm:$0xff] }
  0x84   :  { %v3709_v33 = vpop.permute.xlu1 %3708  ;;  %v264_v37 = vpack.c.bf16 %v233_v32, %v232_v31 }
  0x85   :  { %v250_v34 = vsel %vm227_vm0, %v3338_v29, %v3705_v28  ;;  %v251_v35 = vsel %vm227_vm0, %v3339_v30, %v3706_v27  ;;  %v3711_v38 = vunpack.i.h.bf16 %v3709_v33  ;;  %v3710_v39 = vunpack.i.l.bf16 %v3709_v33 }
  0x86   :  { %v3714_v36 = vpop.permute.xlu0 %3713  ;;  %v267_v40 = vpack.c.bf16 %v251_v35, %v250_v34 }
  0x87   :  { %v3716_v41 = vunpack.i.h.bf16 %v3714_v36  ;;  %v3715_v42 = vunpack.i.l.bf16 %v3714_v36  ;;  %v234_v45 = vsel %vm227_vm0, %v3337_v16, %v3710_v39  ;;  %v235_v46 = vsel %vm227_vm0, %v3338_v29, %v3711_v38 }
  0x88   :  { %452 = vmatmul.mubr.bf16.gmra.mxu0 %v262_v23  ;;  %v3719_v47 = vpop.permute.xlu1 %3718  ;;  %v266_v51 = vpack.c.bf16 %v235_v46, %v234_v45  ;;  %v3347_v23 = vld [vmem:[%s5220_s0 + $0x110] sm:$0xff]  ;;  %v3873_v36 = vmov 1983009808   ;;  %v544_v38 = vlaneseq }
  0x89   :  { %459 = vmatprep.mubr.bf16.mxu0 %v265_v26  ;;  %v252_v48 = vsel %vm227_vm0, %v3340_v43, %v3715_v42  ;;  %v253_v49 = vsel %vm227_vm0, %v3341_v44, %v3716_v41  ;;  %v3721_v52 = vunpack.i.h.bf16 %v3719_v47  ;;  %v3720_v53 = vunpack.i.l.bf16 %v3719_v47  ;;  %v4139_v42 = vld [vmem:[%s5222_s2] ss:$0 sm:$0xff]  ;;  %s3874_s2 = smov 32  }
  0x8a   :  { %v3724_v50 = vpop.permute.xlu0 %3723  ;;  %v269_v54 = vpack.c.bf16 %v253_v49, %v252_v48  ;;  %v4134_v41 = vshrl.u32 %v544_v38, 7 }
  0x8b   :  { %v3726_v56 = vunpack.i.h.bf16 %v3724_v50  ;;  %v3725_v57 = vunpack.i.l.bf16 %v3724_v50  ;;  %v236_v60 = vsel %vm227_vm0, %v42_v55, %v3720_v53  ;;  %v237_v61 = vsel %vm227_vm0, %v3340_v43, %v3721_v52 }
  0x8c   :  { %v3729_v62 = vpop.permute.xlu1 %3728  ;;  %v268_v2 = vpack.c.bf16 %v237_v61, %v236_v60  ;;  %v4149_v52 = vsub.s32 1, %v4134_v41 }
  0x8d   :  { %v254_v63 = vsel %vm227_vm0, %v3342_v58, %v3725_v57  ;;  %v255_v0 = vsel %vm227_vm0, %v3343_v59, %v3726_v56  ;;  %v3731_v3 = vunpack.i.h.bf16 %v3729_v62  ;;  %v3730_v4 = vunpack.i.l.bf16 %v3729_v62 }
  0x8e   :  { %v3734_v1 = vpop.permute.xlu0 %3733  ;;  %v271_v5 = vpack.c.bf16 %v255_v0, %v254_v63 }
  0x8f   :  { %v3736_v6 = vunpack.i.h.bf16 %v3734_v1  ;;  %v3735_v7 = vunpack.i.l.bf16 %v3734_v1  ;;  %v238_v10 = vsel %vm227_vm0, %v3341_v44, %v3730_v4  ;;  %v239_v11 = vsel %vm227_vm0, %v3342_v58, %v3731_v3 }
  0x90   :  { %460 = vmatmul.mubr.bf16.gmra.mxu0 %v264_v37  ;;  %v3739_v12 = vpop.permute.xlu1 %3738  ;;  %v270_v16 = vpack.c.bf16 %v239_v11, %v238_v10  ;;  %v542_v37 = vunpack.c.l.s4 %v3873_v36 }
  0x91   :  { %467 = vmatprep.mubr.bf16.mxu0 %v267_v40  ;;  %v256_v13 = vsel %vm227_vm0, %v3344_v8, %v3735_v7  ;;  %v257_v14 = vsel %vm227_vm0, %v3345_v9, %v3736_v6  ;;  %v3741_v17 = vunpack.i.h.bf16 %v3739_v12  ;;  %v3740_v18 = vunpack.i.l.bf16 %v3739_v12 }
  0x92   :  { %v3744_v15 = vpop.permute.xlu0 %3743  ;;  %v273_v19 = vpack.c.bf16 %v257_v14, %v256_v13  ;;  %v543_v40 = vunpack.c.0.s8 %v542_v37 }
  0x93   :  { %v3746_v20 = vunpack.i.h.bf16 %v3744_v15  ;;  %v3745_v21 = vunpack.i.l.bf16 %v3744_v15  ;;  %v240_v24 = vsel %vm227_vm0, %v3343_v59, %v3740_v18  ;;  %v241_v25 = vsel %vm227_vm0, %v3344_v8, %v3741_v17 }
  0x94   :  { %v3749_v26 = vpop.permute.xlu1 %3748  ;;  %v272_v29 = vpack.c.bf16 %v241_v25, %v240_v24  ;;  %v4143_v47 = vsub.s32 %v543_v40, %v4134_v41 }
  0x95   :  { %v258_v27 = vsel %vm227_vm0, %v3346_v22, %v3745_v21  ;;  %v259_v28 = vsel %vm227_vm0, %v3347_v23, %v3746_v20  ;;  %v3751_v30 = vunpack.i.h.bf16 %v3749_v26  ;;  %v3750_v31 = vunpack.i.l.bf16 %v3749_v26 }
  0x96   :  { %v275_v32 = vpack.c.bf16 %v259_v28, %v258_v27 }
  0x97   :  { %v242_v33 = vsel %vm227_vm0, %v3345_v9, %v3750_v31  ;;  %v243_v34 = vsel %vm227_vm0, %v3346_v22, %v3751_v30 }
  0x98   :  { %468 = vmatmul.mubr.bf16.gmra.mxu0 %v266_v51  ;;  %v274_v35 = vpack.c.bf16 %v243_v34, %v242_v33  ;;  %v4146_v51 = vsub.s32 0, %v4134_v41 }
  0x99   :  { %475 = vmatprep.mubr.bf16.mxu0 %v269_v54 }
  0xa0   :  { %476 = vmatmul.mubr.bf16.gmra.mxu0 %v268_v2 }
  0xa1   :  { %483 = vmatprep.mubr.bf16.mxu0 %v271_v5 }
  0xa8   :  { %484 = vmatmul.mubr.bf16.gmra.mxu0 %v270_v16 }
  0xa9   :  { %491 = vmatprep.mubr.bf16.mxu0 %v273_v19 }
  0xb0   :  { %492 = vmatmul.mubr.bf16.gmra.mxu0 %v272_v29 }
  0xb1   :  { %499 = vmatprep.mubr.bf16.mxu0 %v275_v32 }
  0xb8   :  { %500 = vmatmul.mubr.bf16.gmra.mxu0 %v274_v35 }
 0x140   :  { %v3482_v39 = vpop.f32.mrf.mxu0 }
 0x142   :  { %v3483_v43 = vpop.f32.mrf.mxu0 }
 0x143   :  { %v3484_v44 = vadd.f32 %v3483_v43, %v3482_v39 }
 0x144   :  { %v3485_v45 = vpop.f32.mrf.mxu0 }
 0x145   :  { %v446_v46 = vadd.f32 %v3484_v44, %v4139_v42 }
 0x146   :  { %v3486_v48 = vpop.f32.mrf.mxu0 }
 0x147   :  { %v508_v49 = vmax.f32 %v446_v46, 0.0  ;;  %v3487_v50 = vadd.f32 %v3486_v48, %v3485_v45 }
 0x148   :  { %v3488_v53 = vpop.f32.mrf.mxu0 }
 0x149   :  { %v540_v54 = vcombine.high %v508_v49, %v508_v49  ;;  %v547_v55 = vrot.slane %v508_v49, %v4143_v47  ;;  %v449_v56 = vadd.f32 %v3487_v50, %v4139_v42 }
 0x14a   :  { %v3489_v57 = vpop.f32.mrf.mxu0 }
 0x14b   :  { %v554_v58 = vrot.slane %v540_v54, %v4143_v47  ;;  %v555_v59 = vcombine.high %v547_v55, %v547_v55  ;;  %v815_v60 = vrot.slane %v547_v55, %v4146_v51  ;;  %v978_v61 = vrot.slane %v547_v55, %v4149_v52 }
 0x14c   :  { %v509_v62 = vmax.f32 %v449_v56, 0.0  ;;  %v3490_v63 = vadd.f32 %v3489_v57, %v3488_v53  ;;  %v3491_v0 = vpop.f32.mrf.mxu0 }
 0x14d   :  { %v819_v1 = vrot.slane %v555_v59, %v4146_v51  ;;  %v4157_v2 = vcombine.high %v554_v58, %v554_v58  ;;  %v982_v3 = vrot.slane %v555_v59, %v4149_v52  ;;  %v986_v4 = vrot.slane %v554_v58, %v4149_v52 }
 0x14e   :  { %v557_v5 = vcombine.high %v509_v62, %v509_v62  ;;  %v564_v6 = vrot.slane %v509_v62, %v4143_v47  ;;  %v454_v7 = vadd.f32 %v3490_v63, %v4139_v42  ;;  %v3492_v8 = vpop.f32.mrf.mxu0  ;;  %v823_v9 = vrot.slane %v554_v58, %v4146_v51 }
 0x14f   :  { %v3493_v10 = vadd.f32 %v3492_v8, %v3491_v0  ;;  %v990_v11 = vrot.slane %v4157_v2, %v4149_v52  ;;  %v1103_v12 = vsel %vm940_vm1, %v982_v3, %v978_v61  ;;  %v941_v13 = vsel %vm940_vm1, %v819_v1, %v815_v60 }
 0x150   :  { %v571_v14 = vrot.slane %v557_v5, %v4143_v47  ;;  %v572_v15 = vcombine.high %v564_v6, %v564_v6  ;;  %v1154_v16 = vrot.slane %v564_v6, %v4146_v51  ;;  %v3494_v17 = vpop.f32.mrf.mxu0  ;;  %v510_v18 = vmax.f32 %v454_v7, 0.0 }
 0x151   :  { %v457_v19 = vadd.f32 %v3493_v10, %v4139_v42  ;;  %v1104_v20 = vsel %vm942_vm2, %v986_v4, %v1103_v12  ;;  %v4173_v21 = vsel %vm942_vm2, %v823_v9, %v941_v13  ;;  %v1330_v31 = vrot.slane %v564_v6, %v4149_v52 }
 0x152   :  { %v3495_v22 = vpop.f32.mrf.mxu0  ;;  %v1105_v23 = vsel %vm944_vm3, %v990_v11, %v1104_v20  ;;  %v573_v24 = vcombine.high %v571_v14, %v571_v14  ;;  %v1158_v25 = vrot.slane %v572_v15, %v4146_v51  ;;  %v1162_v26 = vrot.slane %v571_v14, %v4146_v51 }
 0x153   :  { %v574_v27 = vcombine.high %v510_v18, %v510_v18  ;;  %v4179_v28 = vrot.slane %v510_v18, %v4143_v47  ;;  %v511_v29 = vmax.f32 %v457_v19, 0.0  ;;  %v3496_v30 = vadd.f32 %v3495_v22, %v3494_v17  ;;  %1127 = vrot.lane.b32.xlu0 %v1105_v23, %s3874_s2 }
 0x154   :  { %v3497_v32 = vpop.f32.mrf.mxu0  ;;  %v1166_v33 = vrot.slane %v573_v24, %v4146_v51  ;;  %v1279_v34 = vsel %vm940_vm1, %v1158_v25, %v1154_v16  ;;  %v1334_v37 = vrot.slane %v572_v15, %v4149_v52  ;;  %v1338_v38 = vrot.slane %v571_v14, %v4149_v52 }
 0x155   :  { %v4186_v35 = vrot.slane %v574_v27, %v4143_v47  ;;  %v4190_v36 = vcombine.high %v4179_v28, %v4179_v28  ;;  %v591_v39 = vcombine.high %v511_v29, %v511_v29  ;;  %v4195_v40 = vrot.slane %v511_v29, %v4143_v47 }
 0x156   :  { %v462_v43 = vadd.f32 %v3496_v30, %v4139_v42  ;;  %v3498_v44 = vpop.f32.mrf.mxu0  ;;  %v1280_v45 = vsel %vm942_vm2, %v1162_v26, %v1279_v34  ;;  %v994_v48 = vrot.slane %v4179_v28, %v4149_v52  ;;  %v1342_v57 = vrot.slane %v573_v24, %v4149_v52 }
 0x157   :  { %v3499_v49 = vadd.f32 %v3498_v44, %v3497_v32  ;;  %v1281_v50 = vsel %vm944_vm3, %v1166_v33, %v1280_v45  ;;  %v4207_v54 = vrot.slane %v591_v39, %v4143_v47  ;;  %v606_v55 = vcombine.high %v4195_v40, %v4195_v40 }
 0x158   :  { %1303 = vrot.lane.b32.xlu1 %v1281_v50, %s3872_s19  ;;  %v3500_v56 = vpop.f32.mrf.mxu0  ;;  %v512_v58 = vmax.f32 %v462_v43, 0.0  ;;  %v1455_v60 = vsel %vm940_vm1, %v1334_v37, %v1330_v31  ;;  %v4217_v61 = vcombine.high %v4186_v35, %v4186_v35  ;;  %v1170_v62 = vrot.slane %v4195_v40, %v4146_v51 }
 0x159   :  { %v465_v59 = vadd.f32 %v3499_v49, %v4139_v42  ;;  %v1456_v0 = vsel %vm942_vm2, %v1338_v38, %v1455_v60  ;;  %v998_v1 = vrot.slane %v4190_v36, %v4149_v52  ;;  %v1002_v3 = vrot.slane %v4186_v35, %v4149_v52 }
 0x15a   :  { %v3501_v63 = vpop.f32.mrf.mxu0  ;;  %v608_v4 = vcombine.high %v512_v58, %v512_v58  ;;  %v4227_v5 = vrot.slane %v512_v58, %v4143_v47  ;;  %v1346_v8 = vrot.slane %v4195_v40, %v4149_v52  ;;  %v1457_v9 = vsel %vm944_vm3, %v1342_v57, %v1456_v0 }
 0x15b   :  { %v513_v6 = vmax.f32 %v465_v59, 0.0  ;;  %v3502_v7 = vadd.f32 %v3501_v63, %v3500_v56  ;;  %v1006_v10 = vrot.slane %v4217_v61, %v4149_v52  ;;  %v1106_v11 = vsel %vm940_vm1, %v998_v1, %v994_v48 }
 0x15c   :  { %v3503_v12 = vpop.f32.mrf.mxu0  ;;  %v4236_v13 = vrot.slane %v608_v4, %v4143_v47  ;;  %v4240_v14 = vcombine.high %v4227_v5, %v4227_v5  ;;  %1479 = vrot.lane.b32.xlu1 %v1457_v9, %s3875_s12  ;;  %v607_v15 = vcombine.high %v4207_v54, %v4207_v54  ;;  %v1350_v16 = vrot.slane %v606_v55, %v4149_v52 }
 0x15d   :  { %v625_v17 = vcombine.high %v513_v6, %v513_v6  ;;  %v4247_v18 = vrot.slane %v513_v6, %v4143_v47  ;;  %v470_v19 = vadd.f32 %v3502_v7, %v4139_v42  ;;  %v1107_v20 = vsel %vm942_vm2, %v1002_v3, %v1106_v11 }
 0x15e   :  { %v3504_v22 = vpop.f32.mrf.mxu0  ;;  %v1108_v24 = vsel %vm944_vm3, %v1006_v10, %v1107_v20  ;;  %v1354_v26 = vrot.slane %v4207_v54, %v4149_v52  ;;  %v1010_v29 = vrot.slane %v4227_v5, %v4149_v52  ;;  %v1358_v37 = vrot.slane %v607_v15, %v4149_v52 }
 0x15f   :  { %v3505_v25 = vadd.f32 %v3504_v22, %v3503_v12  ;;  %v4261_v30 = vrot.slane %v625_v17, %v4143_v47  ;;  %v4265_v31 = vcombine.high %v4247_v18, %v4247_v18  ;;  %1129 = vrot.lane.b32.xlu0 %v1108_v24, %s3874_s2  ;;  %v514_v33 = vmax.f32 %v470_v19, 0.0 }
 0x160   :  { %v3506_v32 = vpop.f32.mrf.mxu0  ;;  %v1458_v38 = vsel %vm940_vm1, %v1350_v16, %v1346_v8  ;;  %v1174_v40 = vrot.slane %v606_v55, %v4146_v51  ;;  %v1178_v43 = vrot.slane %v4207_v54, %v4146_v51  ;;  %v1182_v44 = vrot.slane %v607_v15, %v4146_v51 }
 0x161   :  { %v473_v34 = vadd.f32 %v3505_v25, %v4139_v42  ;;  %v1459_v39 = vsel %vm942_vm2, %v1354_v26, %v1458_v38  ;;  %v642_v48 = vcombine.high %v514_v33, %v514_v33  ;;  %v4277_v49 = vrot.slane %v514_v33, %v4143_v47 }
 0x162   :  { %v3507_v45 = vpop.f32.mrf.mxu0  ;;  %v1460_v56 = vsel %vm944_vm3, %v1358_v37, %v1459_v39  ;;  %v1186_v57 = vrot.slane %v4247_v18, %v4146_v51  ;;  %v1282_v55 = vsel %vm940_vm1, %v1174_v40, %v1170_v62  ;;  %v4286_v54 = vcombine.high %v4236_v13, %v4236_v13 }
 0x163   :  { %v515_v50 = vmax.f32 %v473_v34, 0.0  ;;  %1481 = vrot.lane.b32.xlu1 %v1460_v56, %s3875_s12  ;;  %v3508_v58 = vadd.f32 %v3507_v45, %v3506_v32  ;;  %v1362_v60 = vrot.slane %v4247_v18, %v4149_v52  ;;  %v4291_v63 = vrot.slane %v642_v48, %v4143_v47 }
 0x164   :  { %v3509_v59 = vpop.f32.mrf.mxu0  ;;  %v4295_v0 = vcombine.high %v4277_v49, %v4277_v49  ;;  %v1014_v1 = vrot.slane %v4240_v14, %v4149_v52  ;;  %v1283_v4 = vsel %vm942_vm2, %v1178_v43, %v1282_v55  ;;  %v1018_v10 = vrot.slane %v4236_v13, %v4149_v52 }
 0x165   :  { %v659_v62 = vcombine.high %v515_v50, %v515_v50  ;;  %v4300_v3 = vrot.slane %v515_v50, %v4143_v47  ;;  %v478_v6 = vadd.f32 %v3508_v58, %v4139_v42  ;;  %v1284_v9 = vsel %vm944_vm3, %v1182_v44, %v1283_v4 }
 0x166   :  { %v3510_v7 = vpop.f32.mrf.mxu0  ;;  %v1022_v11 = vrot.slane %v4286_v54, %v4149_v52  ;;  %1305 = vrot.lane.b32.xlu0 %v1284_v9, %s3872_s19  ;;  %v1109_v20 = vsel %vm940_vm1, %v1014_v1, %v1010_v29  ;;  %v641_v24 = vcombine.high %v4261_v30, %v4261_v30  ;;  %v1190_v26 = vrot.slane %v4265_v31, %v4146_v51 }
 0x167   :  { %v4316_v16 = vrot.slane %v659_v62, %v4143_v47  ;;  %v4320_v17 = vcombine.high %v4300_v3, %v4300_v3  ;;  %v516_v19 = vmax.f32 %v478_v6, 0.0  ;;  %v3511_v22 = vadd.f32 %v3510_v7, %v3509_v59 }
 0x168   :  { %v3512_v18 = vpop.f32.mrf.mxu0  ;;  %v1110_v25 = vsel %vm942_vm2, %v1018_v10, %v1109_v20  ;;  %v1194_v32 = vrot.slane %v4261_v30, %v4146_v51  ;;  %v1366_v34 = vrot.slane %v4265_v31, %v4149_v52  ;;  %v1198_v40 = vrot.slane %v641_v24, %v4146_v51 }
 0x169   :  { %v676_v37 = vcombine.high %v516_v19, %v516_v19  ;;  %v4334_v38 = vrot.slane %v516_v19, %v4143_v47  ;;  %v1111_v29 = vsel %vm944_vm3, %v1022_v11, %v1110_v25  ;;  %v481_v39 = vadd.f32 %v3511_v22, %v4139_v42 }
 0x16a   :  { %v3513_v33 = vpop.f32.mrf.mxu0  ;;  %1131 = vrot.lane.b32.xlu1 %v1111_v29, %s3874_s2  ;;  %v1285_v43 = vsel %vm940_vm1, %v1190_v26, %v1186_v57  ;;  %v1370_v45 = vrot.slane %v4261_v30, %v4149_v52  ;;  %v1202_v31 = vrot.slane %v4300_v3, %v4146_v51  ;;  %v1374_v30 = vrot.slane %v641_v24, %v4149_v52 }
 0x16b   :  { %v3514_v44 = vadd.f32 %v3513_v33, %v3512_v18  ;;  %v4348_v56 = vrot.slane %v676_v37, %v4143_v47  ;;  %v4352_v55 = vcombine.high %v4334_v38, %v4334_v38  ;;  %v517_v58 = vmax.f32 %v481_v39, 0.0 }
 0x16c   :  { %v3515_v48 = vpop.f32.mrf.mxu0  ;;  %v1286_v57 = vsel %vm942_vm2, %v1194_v32, %v1285_v43  ;;  %v1461_v6 = vsel %vm940_vm1, %v1366_v34, %v1362_v60  ;;  %v1042_v20 = vrot.slane %v4334_v38, %v4149_v52  ;;  %v3778_v43 = vld [vmem:[%s5223_s3 + $0x78] sm:$0xff]  }
 0x16d   :  { %v486_v59 = vadd.f32 %v3514_v44, %v4139_v42  ;;  %v1287_v4 = vsel %vm944_vm3, %v1198_v40, %v1286_v57  ;;  %v693_v9 = vcombine.high %v517_v58, %v517_v58  ;;  %v4362_v10 = vrot.slane %v517_v58, %v4143_v47  ;;  %3530 = vmatprep.subr.bf16.mxu1 %v3778_v43 }
 0x16e   :  { %v3516_v1 = vpop.f32.mrf.mxu0  ;;  %1307 = vrot.lane.b32.xlu0 %v1287_v4, %s3872_s19  ;;  %v1462_v18 = vsel %vm942_vm2, %v1370_v45, %v1461_v6  ;;  %v4371_v24 = vcombine.high %v4348_v56, %v4348_v56  ;;  %v1046_v60 = vrot.slane %v4352_v55, %v4149_v52  ;;  %v1050_v45 = vrot.slane %v4348_v56, %v4149_v52 }
 0x16f   :  { %v3517_v7 = vadd.f32 %v3516_v1, %v3515_v48  ;;  %v518_v11 = vmax.f32 %v486_v59, 0.0  ;;  %v4378_v26 = vrot.slane %v693_v9, %v4143_v47  ;;  %v4382_v32 = vcombine.high %v4362_v10, %v4362_v10 }
 0x170   :  { %v3518_v19 = vpop.f32.mrf.mxu0  ;;  %v1463_v33 = vsel %vm944_vm3, %v1374_v30, %v1462_v18  ;;  %v1218_v44 = vrot.slane %v4362_v10, %v4146_v51  ;;  %v1054_v48 = vrot.slane %v4371_v24, %v4149_v52  ;;  %v1115_v58 = vsel %vm940_vm1, %v1046_v60, %v1042_v20 }
 0x171   :  { %v489_v22 = vadd.f32 %v3517_v7, %v4139_v42  ;;  %v710_v37 = vcombine.high %v518_v11, %v518_v11  ;;  %v4386_v29 = vrot.slane %v518_v11, %v4143_v47  ;;  %v4410_v4 = vcombine.high %v4378_v26, %v4378_v26 }
 0x172   :  { %v3519_v34 = vpop.f32.mrf.mxu0  ;;  %1483 = vrot.lane.b32.xlu0 %v1463_v33, %s3875_s12  ;;  %v1116_v11 = vsel %vm942_vm2, %v1050_v45, %v1115_v58  ;;  %v1222_v60 = vrot.slane %v4382_v32, %v4146_v51  ;;  %v3779_v33 = vld [vmem:[%s5223_s3 + $0x38] sm:$0xff]  }
 0x173   :  { %v519_v39 = vmax.f32 %v489_v22, 0.0  ;;  %v3520_v40 = vadd.f32 %v3519_v34, %v3518_v19  ;;  %v4402_v30 = vrot.slane %v710_v37, %v4143_v47  ;;  %v4406_v1 = vcombine.high %v4386_v29, %v4386_v29  ;;  %v3780_v34 = vld [vmem:[%s5223_s3 + $0x70] sm:$0xff]   ;;  %3531 = vmatpush3.bf16.msra.mxu1 %v3779_v33 }
 0x174   :  { %v3521_v57 = vpop.f32.mrf.mxu0  ;;  %v1117_v20 = vsel %vm944_vm3, %v1054_v48, %v1116_v11  ;;  %v1230_v11 = vrot.slane %v4410_v4, %v4146_v51  ;;  %3532 = vmatprep.subr.bf16.mxu1 %v3780_v34 }
 0x175   :  { %v727_v6 = vcombine.high %v519_v39, %v519_v39  ;;  %v4413_v7 = vrot.slane %v519_v39, %v4143_v47  ;;  %v494_v9 = vadd.f32 %v3520_v40, %v4139_v42  ;;  %v1058_v39 = vrot.slane %v4386_v29, %v4149_v52  ;;  %1135 = vrot.lane.b32.xlu1 %v1117_v20, %s3874_s2 }
 0x176   :  { %v3522_v18 = vpop.f32.mrf.mxu0  ;;  %v1062_v20 = vrot.slane %v4406_v1, %v4149_v52 }
 0x177   :  { %v3523_v22 = vadd.f32 %v3522_v18, %v3521_v57  ;;  %v741_v40 = vrot.slane %v727_v6, %v4143_v47  ;;  %v742_v43 = vcombine.high %v4413_v7, %v4413_v7  ;;  %v520_v48 = vmax.f32 %v494_v9, 0.0 }
 0x178   :  { %v3524_v45 = vpop.f32.mrf.mxu0  ;;  %v1226_v57 = vrot.slane %v4378_v26, %v4146_v51  ;;  %v1291_v18 = vsel %vm940_vm1, %v1222_v60, %v1218_v44  ;;  %v4444_v6 = vcombine.high %v4402_v30, %v4402_v30  ;;  %v1066_v9 = vrot.slane %v4402_v30, %v4149_v52 }
 0x179   :  { %v497_v58 = vadd.f32 %v3523_v22, %v4139_v42  ;;  %v744_v12 = vcombine.high %v520_v48, %v520_v48  ;;  %v4451_v8 = vrot.slane %v520_v48, %v4143_v47  ;;  %v1118_v19 = vsel %vm940_vm1, %v1062_v20, %v1058_v39 }
 0x17a   :  { %v3525_v22 = vpop.f32.mrf.mxu0  ;;  %v1292_v33 = vsel %vm942_vm2, %v1226_v57, %v1291_v18  ;;  %v1070_v60 = vrot.slane %v4444_v6, %v4149_v52  ;;  %v743_v25 = vcombine.high %v741_v40, %v741_v40  ;;  %v1234_v62 = vrot.slane %v4413_v7, %v4146_v51 }
 0x17b   :  { %v521_v37 = vmax.f32 %v497_v58, 0.0  ;;  %v1293_v44 = vsel %vm944_vm3, %v1230_v11, %v1292_v33  ;;  %v1410_v34 = vrot.slane %v4413_v7, %v4149_v52  ;;  %v4463_v48 = vrot.slane %v744_v12, %v4143_v47 }
 0x17c   :  { %v4467_v58 = vcombine.high %v4451_v8, %v4451_v8  ;;  %1311 = vrot.lane.b32.xlu1 %v1293_v44, %s3872_s19  ;;  %v3527_v57 = vpop.f32.mrf.mxu0  ;;  %v1119_v18 = vsel %vm942_vm2, %v1066_v9, %v1118_v19  ;;  %v1238_v20 = vrot.slane %v742_v43, %v4146_v51  ;;  %v1242_v33 = vrot.slane %v741_v40, %v4146_v51 }
 0x17d   :  { %v761_v11 = vcombine.high %v521_v37, %v521_v37  ;;  %v4471_v39 = vrot.slane %v521_v37, %v4143_v47  ;;  %v1120_v12 = vsel %vm944_vm3, %v1070_v60, %v1119_v18  ;;  %v1246_v27 = vrot.slane %v743_v25, %v4146_v51 }
 0x17e   :  { %v1074_v44 = vrot.slane %v4451_v8, %v4149_v52  ;;  %1137 = vrot.lane.b32.xlu0 %v1120_v12, %s3874_s2  ;;  %v1294_v9 = vsel %vm940_vm1, %v1238_v20, %v1234_v62  ;;  %v3526_v60 = vadd.f32 %v3525_v22, %v3524_v45  ;;  %v1414_v18 = vrot.slane %v742_v43, %v4149_v52  ;;  %v3528_v53 = vpop.f32.mrf.mxu0  ;;  %v3781_v62 = vld [vmem:[%s5223_s3 + $0x30] sm:$0xff]  }
 0x17f   :  { %v775_v23 = vrot.slane %v761_v11, %v4143_v47  ;;  %v776_v37 = vcombine.high %v4471_v39, %v4471_v39  ;;  %v1426_v19 = vrot.slane %v4471_v39, %v4149_v52  ;;  %v1418_v7 = vrot.slane %v741_v40, %v4149_v52  ;;  %v3782_v40 = vld [vmem:[%s5223_s3 + $0x68] sm:$0xff]   ;;  %3533 = vmatpush3.bf16.msra.mxu1 %v3781_v62 }
 0x180   :  { %v1295_v46 = vsel %vm942_vm2, %v1242_v33, %v1294_v9  ;;  %v1422_v11 = vrot.slane %v743_v25, %v4149_v52  ;;  %v4495_v15 = vcombine.high %v4463_v48, %v4463_v48  ;;  %v1078_v50 = vrot.slane %v4467_v58, %v4149_v52  ;;  %3534 = vmatprep.subr.bf16.mxu1 %v3782_v40 }
 0x181   :  { %v1296_v43 = vsel %vm944_vm3, %v1246_v27, %v1295_v46  ;;  %v502_v45 = vadd.f32 %v3526_v60, %v4139_v42  ;;  %v1470_v25 = vsel %vm940_vm1, %v1414_v18, %v1410_v34  ;;  %v1082_v22 = vrot.slane %v4463_v48, %v4149_v52 }
 0x182   :  { %1313 = vrot.lane.b32.xlu1 %v1296_v43, %s3872_s19  ;;  %v1471_v20 = vsel %vm942_vm2, %v1418_v7, %v1470_v25  ;;  %v1086_v12 = vrot.slane %v4495_v15, %v4149_v52  ;;  %v1121_v33 = vsel %vm940_vm1, %v1078_v50, %v1074_v44  ;;  %v3529_v9 = vadd.f32 %v3528_v53, %v3527_v57 }
 0x183   :  { %v522_v59 = vmax.f32 %v502_v45, 0.0  ;;  %v1472_v46 = vsel %vm944_vm3, %v1422_v11, %v1471_v20  ;;  %v1122_v27 = vsel %vm942_vm2, %v1082_v22, %v1121_v33  ;;  %v777_v60 = vcombine.high %v775_v23, %v775_v23 }
 0x184   :  { %v1123_v34 = vsel %vm944_vm3, %v1086_v12, %v1122_v27  ;;  %v505_v18 = vadd.f32 %v3529_v9, %v4139_v42  ;;  %v1430_v43 = vrot.slane %v776_v37, %v4149_v52  ;;  %v1434_v7 = vrot.slane %v775_v23, %v4149_v52 }
 0x185   :  { %v778_v25 = vcombine.high %v522_v59, %v522_v59  ;;  %v4522_v50 = vrot.slane %v522_v59, %v4143_v47  ;;  %1139 = vrot.lane.b32.xlu0 %v1123_v34, %s3874_s2  ;;  %v1438_v53 = vrot.slane %v777_v60, %v4149_v52  ;;  %v1254_v57 = vrot.slane %v776_v37, %v4146_v51 }
 0x186   :  { %v1250_v44 = vrot.slane %v4471_v39, %v4146_v51  ;;  %1489 = vrot.lane.b32.xlu1 %v1472_v46, %s3875_s12  ;;  %v523_v42 = vmax.f32 %v505_v18, 0.0  ;;  %v1473_v11 = vsel %vm940_vm1, %v1430_v43, %v1426_v19  ;;  %v1258_v62 = vrot.slane %v775_v23, %v4146_v51  ;;  %v3783_v39 = vld [vmem:[%s5223_s3 + $0x28] sm:$0xff]   ;;  %v3784_v23 = vld [vmem:[%s5223_s3 + $0x60] sm:$0xff]  }
 0x187   :  { %v915_v59 = vrot.slane %v4467_v58, %v4146_v51  ;;  %v4535_v40 = vrot.slane %v778_v25, %v4143_v47  ;;  %v4539_v45 = vcombine.high %v4522_v50, %v4522_v50  ;;  %v1262_v37 = vrot.slane %v777_v60, %v4146_v51  ;;  %3535 = vmatpush3.bf16.msra.mxu1 %v3783_v39 }
 0x188   :  { %v795_v19 = vcombine.high %v523_v42, %v523_v42  ;;  %v4549_v22 = vrot.slane %v523_v42, %v4143_v47  ;;  %v1474_v20 = vsel %vm942_vm2, %v1434_v7, %v1473_v11  ;;  %v1297_v12 = vsel %vm940_vm1, %v1254_v57, %v1250_v44  ;;  %3536 = vmatprep.subr.bf16.mxu1 %v3784_v23  ;;  %v3785_v57 = vld [vmem:[%s5223_s3 + $0x20] sm:$0xff]   ;;  %v3786_v44 = vld [vmem:[%s5223_s3 + $0x58] sm:$0xff]  }
 0x189   :  { %v1090_v33 = vrot.slane %v4522_v50, %v4149_v52  ;;  %v1475_v9 = vsel %vm944_vm3, %v1438_v53, %v1474_v20  ;;  %v1298_v46 = vsel %vm942_vm2, %v1258_v62, %v1297_v12  ;;  %v675_v27 = vcombine.high %v4316_v16, %v4316_v16 }
 0x18a   :  { %v4560_v60 = vrot.slane %v795_v19, %v4143_v47  ;;  %v4564_v34 = vcombine.high %v4549_v22, %v4549_v22  ;;  %v1266_v18 = vrot.slane %v4549_v22, %v4146_v51  ;;  %v1442_v43 = vrot.slane %v4549_v22, %v4149_v52  ;;  %1491 = vrot.lane.b32.xlu1 %v1475_v9, %s3875_s12 }
 0x18b   :  { %v1299_v7 = vsel %vm944_vm3, %v1262_v37, %v1298_v46  ;;  %v1206_v25 = vrot.slane %v4320_v17, %v4146_v51  ;;  %v1210_v47 = vrot.slane %v4316_v16, %v4146_v51  ;;  %v1214_v53 = vrot.slane %v675_v27, %v4146_v51  ;;  %3537 = vmatpush3.bf16.msra.mxu1 %v3785_v57 }
 0x18c   :  { %1315 = vrot.lane.b32.xlu0 %v1299_v7, %s3872_s19  ;;  %v1398_v42 = vrot.slane %v4382_v32, %v4149_v52  ;;  %v1402_v11 = vrot.slane %v4378_v26, %v4149_v52  ;;  %v1406_v62 = vrot.slane %v4410_v4, %v4149_v52  ;;  %v1382_v37 = vrot.slane %v4320_v17, %v4149_v52 }
 0x18d   :  { %v1288_v39 = vsel %vm940_vm1, %v1206_v25, %v1202_v31  ;;  %v1386_v23 = vrot.slane %v4316_v16, %v4149_v52  ;;  %v1390_v19 = vrot.slane %v675_v27, %v4149_v52  ;;  %v4601_v32 = vcombine.high %v4291_v63, %v4291_v63  ;;  %3538 = vmatprep.subr.bf16.mxu1 %v3786_v44 }
 0x18e   :  { %v1289_v26 = vsel %vm942_vm2, %v1210_v47, %v1288_v39  ;;  %v5230_v17 = vrot.slane %v4362_v10, %v4149_v52  ;;  %v5231_v31 = vrot.slane %v4300_v3, %v4149_v52  ;;  %v1030_v16 = vrot.slane %v4295_v0, %v4149_v52 }
 0x18f   :  { %v1290_v20 = vsel %vm944_vm3, %v1214_v53, %v1289_v26  ;;  %v1034_v10 = vrot.slane %v4291_v63, %v4149_v52  ;;  %v1038_v27 = vrot.slane %v4601_v32, %v4149_v52  ;;  %v5232_v7 = vrot.slane %v4277_v49, %v4149_v52 }
 0x190   :  { %v1467_v4 = vsel %vm940_vm1, %v1398_v42, %v5230_v17  ;;  %v1464_v22 = vsel %vm940_vm1, %v1382_v37, %v5231_v31  ;;  %1309 = vrot.lane.b32.xlu1 %v1290_v20, %s3872_s19  ;;  %v4632_v53 = vcombine.high %v4535_v40, %v4535_v40  ;;  %v1094_v57 = vrot.slane %v4539_v45, %v4149_v52  ;;  %v3787_v42 = vld [vmem:[%s5223_s3 + $0x18] sm:$0xff]   ;;  %v3789_v31 = vld [vmem:[%s5223_s3 + $0x10] sm:$0xff]  }
 0x191   :  { %v1468_v12 = vsel %vm942_vm2, %v1402_v11, %v1467_v4  ;;  %v1465_v9 = vsel %vm942_vm2, %v1386_v23, %v1464_v22  ;;  %v1112_v25 = vsel %vm940_vm1, %v1030_v16, %v5232_v7  ;;  %v1098_v44 = vrot.slane %v4535_v40, %v4149_v52  ;;  %v3788_v23 = vld [vmem:[%s5223_s3 + $0x50] sm:$0xff]   ;;  %3539 = vmatpush3.bf16.msra.mxu1 %v3787_v42  ;;  %v3791_v7 = vld [vmem:[%s5223_s3 + $0x8] sm:$0xff]  }
 0x192   :  { %v1469_v46 = vsel %vm944_vm3, %v1406_v62, %v1468_v12  ;;  %v1466_v3 = vsel %vm944_vm3, %v1390_v19, %v1465_v9  ;;  %v1113_v47 = vsel %vm942_vm2, %v1034_v10, %v1112_v25  ;;  %v811_v62 = vcombine.high %v4560_v60, %v4560_v60  ;;  %3540 = vmatprep.subr.bf16.mxu1 %v3788_v23 }
 0x193   :  { %1487 = vrot.lane.b32.xlu0 %v1469_v46, %s3875_s12  ;;  %v1114_v11 = vsel %vm944_vm3, %v1038_v27, %v1113_v47  ;;  %v1270_v37 = vrot.slane %v4564_v34, %v4146_v51  ;;  %v1274_v39 = vrot.slane %v4560_v60, %v4146_v51  ;;  %v1102_v19 = vrot.slane %v4632_v53, %v4149_v52 }
 0x194   :  { %v1124_v26 = vsel %vm940_vm1, %v1094_v57, %v1090_v33  ;;  %v1446_v17 = vrot.slane %v4564_v34, %v4149_v52  ;;  %v1450_v4 = vrot.slane %v4560_v60, %v4149_v52  ;;  %1485 = vrot.lane.b32.xlu1 %v1466_v3, %s3875_s12  ;;  %v1278_v16 = vrot.slane %v811_v62, %v4146_v51 }
 0x195   :  { %v1125_v22 = vsel %vm942_vm2, %v1098_v44, %v1124_v26  ;;  %v1300_v20 = vsel %vm940_vm1, %v1270_v37, %v1266_v18  ;;  %v1454_v33 = vrot.slane %v811_v62, %v4149_v52  ;;  %v927_v34 = vrot.slane %v4522_v50, %v4146_v51  ;;  %v3790_v50 = vld [vmem:[%s5223_s3 + $0x48] sm:$0xff]   ;;  %3541 = vmatpush3.bf16.msra.mxu1 %v3789_v31 }
 0x196   :  { %v931_v60 = vrot.slane %v4539_v45, %v4146_v51  ;;  %v1301_v12 = vsel %vm942_vm2, %v1274_v39, %v1300_v20  ;;  %v1476_v9 = vsel %vm940_vm1, %v1446_v17, %v1442_v43  ;;  %v1126_v10 = vsel %vm944_vm3, %v1102_v19, %v1125_v22  ;;  %3542 = vmatprep.subr.bf16.mxu1 %v3790_v50 }
 0x197   :  { %1133 = vrot.lane.b32.xlu0 %v1114_v11, %s3874_s2  ;;  %v1477_v46 = vsel %vm942_vm2, %v1450_v4, %v1476_v9  ;;  %v839_v18 = vrot.slane %v4186_v35, %v4146_v51  ;;  %v843_v52 = vrot.slane %v4217_v61, %v4146_v51  ;;  %v1302_v45 = vsel %vm944_vm3, %v1278_v16, %v1301_v12  ;;  %v3793_v4 = vld [vmem:[%s5223_s3] sm:$0xff]  }
 0x198   :  { %v1478_v3 = vsel %vm944_vm3, %v1454_v33, %v1477_v46  ;;  %v5233_v43 = vrot.slane %v4179_v28, %v4146_v51  ;;  %v5234_v27 = vrot.slane %v4190_v36, %v4146_v51  ;;  %v855_v61 = vrot.slane %v4236_v13, %v4146_v51 }
 0x199   :  { %1493 = vrot.lane.b32.xlu1 %v1478_v3, %s3875_s12  ;;  %v859_v28 = vrot.slane %v4286_v54, %v4146_v51  ;;  %v5235_v36 = vrot.slane %v4227_v5, %v4146_v51  ;;  %v5236_v47 = vrot.slane %v4240_v14, %v4146_v51  ;;  %v887_v57 = vrot.slane %v4348_v56, %v4146_v51 }
 0x19a   :  { %v946_v35 = vsel %vm940_vm1, %v5234_v27, %v5233_v43  ;;  %v891_v54 = vrot.slane %v4371_v24, %v4146_v51  ;;  %v5237_v5 = vrot.slane %v4334_v38, %v4146_v51  ;;  %v5238_v14 = vrot.slane %v4352_v55, %v4146_v51  ;;  %3543 = vmatpush3.bf16.msra.mxu1 %v3791_v7 }
 0x19b   :  { %v947_v25 = vsel %vm942_vm2, %v839_v18, %v946_v35  ;;  %v949_v13 = vsel %vm940_vm1, %v5236_v47, %v5235_v36  ;;  %1141 = vrot.lane.b32.xlu0 %v1126_v10, %s3874_s2  ;;  %v903_v37 = vrot.slane %v4402_v30, %v4146_v51  ;;  %v907_v39 = vrot.slane %v4444_v6, %v4146_v51 }
 0x19c   :  { %v948_v44 = vsel %vm944_vm3, %v843_v52, %v947_v25  ;;  %v950_v42 = vsel %vm942_vm2, %v855_v61, %v949_v13  ;;  %v955_v11 = vsel %vm940_vm1, %v5238_v14, %v5237_v5  ;;  %v5239_v38 = vrot.slane %v4386_v29, %v4146_v51 }
 0x19d   :  { %v4722_v62 = vsel %vm944_vm3, %v859_v28, %v950_v42  ;;  %v956_v56 = vsel %vm942_vm2, %v887_v57, %v955_v11  ;;  %v5240_v55 = vrot.slane %v4406_v1, %v4146_v51  ;;  %v919_v19 = vrot.slane %v4463_v48, %v4146_v51 }
 0x19e   :  { %v4730_v24 = vsel %vm944_vm3, %v891_v54, %v956_v56  ;;  %v923_v30 = vrot.slane %v4495_v15, %v4146_v51  ;;  %v5241_v26 = vrot.slane %v4451_v8, %v4146_v51  ;;  %v871_v1 = vrot.slane %v4291_v63, %v4146_v51 }
 0x19f   :  { %v958_v23 = vsel %vm940_vm1, %v5240_v55, %v5239_v38  ;;  %v875_v48 = vrot.slane %v4601_v32, %v4146_v51  ;;  %1317 = vrot.lane.b32.xlu0 %v1302_v45, %s3872_s19  ;;  %v5242_v8 = vrot.slane %v4277_v49, %v4146_v51  ;;  %v5243_v58 = vrot.slane %v4295_v0, %v4146_v51  ;;  %v3792_v32 = vld [vmem:[%s5223_s3 + $0x40] sm:$0xff]   ;;  %v3794_v49 = vld [vmem:[%s5223_s3 + $0xf8] sm:$0xff]  }
 0x1a0   :  { %v959_v6 = vsel %vm942_vm2, %v903_v37, %v958_v23  ;;  %v961_v29 = vsel %vm940_vm1, %v915_v59, %v5241_v26  ;;  %v935_v63 = vrot.slane %v4535_v40, %v4146_v51  ;;  %v939_v40 = vrot.slane %v4632_v53, %v4146_v51  ;;  %3544 = vmatprep.subr.bf16.mxu1 %v3792_v32 }
 0x1a1   :  { %v4757_v15 = vsel %vm944_vm3, %v907_v39, %v959_v6  ;;  %v962_v17 = vsel %vm942_vm2, %v919_v19, %v961_v29  ;;  %v952_v59 = vsel %vm940_vm1, %v5243_v58, %v5242_v8  ;;  %v964_v22 = vsel %vm940_vm1, %v931_v60, %v927_v34  ;;  %3545 = vmatpush3.bf16.msra.mxu1 %v3793_v4 }
 0x1a2   :  { %v4779_v31 = vsel %vm944_vm3, %v923_v30, %v962_v17  ;;  %v953_v0 = vsel %vm942_vm2, %v871_v1, %v952_v59  ;;  %v965_v20 = vsel %vm942_vm2, %v935_v63, %v964_v22  ;;  %3558 = vmatprep.subr.bf16.mxu1 %v3794_v49  ;;  %v3876_v12 = vmov 1966171168  }
 0x1a3   :  { %v4786_v16 = vsel %vm944_vm3, %v875_v48, %v953_v0  ;;  %v4790_v33 = vsel %vm944_vm3, %v939_v40, %v965_v20  ;;  %v1536_v9 = vunpack.c.l.s4 %v3876_v12  ;;  %v827_v10 = vrot.slane %v4157_v2, %v4146_v51 }
 0x1a5   :  { %v1537_v53 = vunpack.c.0.s8 %v1536_v9  ;;  %v945_v60 = vsel %vm944_vm3, %v827_v10, %v4173_v21 }
 0x1a7   :  { %v4798_v50 = vsub.s32 %v1537_v53, %v4134_v41 }
 0x1c5   :  { %v1128_v34 = vpop.permute.xlu0 %1127 }
 0x1c6   :  { %v1504_v18 = vsel %vm1503_vm4, %v945_v60, %v1128_v34 }
 0x1ca   :  { %v1304_v46 = vpop.permute.xlu1 %1303 }
 0x1cb   :  { %v1512_v45 = vsel %vm227_vm0, %v1504_v18, %v1304_v46 }
 0x1ce   :  { %v1480_v52 = vpop.permute.xlu1 %1479 }
 0x1cf   :  { %v1521_v3 = vsel %vm1520_vm5, %v1512_v45, %v1480_v52 }
 0x1d0   :  { %v1541_v51 = vrot.slane %v1521_v3, %v4798_v50 }
 0x1d1   :  { %v1130_v2 = vpop.permute.xlu0 %1129 }
 0x1d2   :  { %v1542_v43 = vcombine.high %v1541_v51, %v1541_v51  ;;  %v1549_v27 = vrot.slane %v1541_v51, %v4798_v50  ;;  %v1505_v21 = vsel %vm1503_vm4, %v948_v44, %v1130_v2 }
 0x1d4   :  { %v1556_v25 = vrot.slane %v1542_v43, %v4798_v50  ;;  %v1557_v28 = vcombine.high %v1549_v27, %v1549_v27 }
 0x1d5   :  { %v1482_v35 = vpop.permute.xlu1 %1481 }
 0x1d6   :  { %v1729_v57 = vcombine.low %v1549_v27, %v1556_v25  ;;  %v1673_v42 = vcombine.high %v1556_v25, %v1556_v25  ;;  %v1845_v54 = vcombine.low %v1556_v25, %v1557_v28 }
 0x1d8   :  { %v1306_v61 = vpop.permute.xlu0 %1305  ;;  %v1739_v37 = vrot.slane %v1729_v57, %v4798_v50  ;;  %v1855_v55 = vrot.slane %v1845_v54, %v4798_v50 }
 0x1d9   :  { %v1513_v7 = vsel %vm227_vm0, %v1505_v21, %v1306_v61 }
 0x1da   :  { %v1522_v41 = vsel %vm1520_vm5, %v1513_v7, %v1482_v35 }
 0x1db   :  { %v1564_v36 = vrot.slane %v1522_v41, %v4798_v50 }
 0x1dc   :  { %v1132_v44 = vpop.permute.xlu1 %1131 }
 0x1dd   :  { %v1565_v47 = vcombine.high %v1564_v36, %v1564_v36  ;;  %v1572_v13 = vrot.slane %v1564_v36, %v4798_v50  ;;  %v1506_v38 = vsel %vm1503_vm4, %v4722_v62, %v1132_v44 }
 0x1df   :  { %v1579_v5 = vrot.slane %v1565_v47, %v4798_v50  ;;  %v1730_v14 = vcombine.low %v1557_v28, %v1572_v13  ;;  %v1580_v1 = vcombine.high %v1572_v13, %v1572_v13 }
 0x1e0   :  { %v1308_v11 = vpop.permute.xlu0 %1307 }
 0x1e1   :  { %v1846_v56 = vcombine.low %v1673_v42, %v1579_v5  ;;  %v1746_v39 = vrot.slane %v1730_v14, %v4798_v50  ;;  %v1514_v19 = vsel %vm227_vm0, %v1506_v38, %v1308_v11  ;;  %v1961_v17 = vcombine.low %v1572_v13, %v1579_v5 }
 0x1e2   :  { %v1731_v4 = vcombine.low %v1579_v5, %v1580_v1  ;;  %v3381_v49 = vcombine.high %v1572_v13, %v1579_v5  ;;  %v1674_v0 = vcombine.high %v1579_v5, %v1579_v5 }
 0x1e3   :  { %v1862_v23 = vrot.slane %v1846_v56, %v4798_v50  ;;  %v1761_v6 = vcombine.low %v1739_v37, %v1746_v39  ;;  %v1970_v40 = vrot.slane %v1961_v17, %v4798_v50 }
 0x1e4   :  { %v1484_v30 = vpop.permute.xlu0 %1483  ;;  %v1753_v46 = vrot.slane %v1731_v4, %v4798_v50  ;;  %v1869_v34 = vrot.slane %v3381_v49, %v4798_v50 }
 0x1e5   :  { %v1523_v26 = vsel %vm1520_vm5, %v1514_v19, %v1484_v30  ;;  %v1877_v29 = vcombine.low %v1855_v55, %v1862_v23  ;;  %v4849_v2 = vrot.slane %v1761_v6, %v4798_v50 }
 0x1e6   :  { %v1587_v48 = vrot.slane %v1523_v26, %v4798_v50 }
 0x1e7   :  { %v1136_v63 = vpop.permute.xlu1 %1135  ;;  %v1885_v27 = vrot.slane %v1877_v29, %v4798_v50 }
 0x1e8   :  { %v1588_v8 = vcombine.high %v1587_v48, %v1587_v48  ;;  %v4821_v58 = vrot.slane %v1587_v48, %v4798_v50  ;;  %v1508_v38 = vsel %vm1503_vm4, %v4730_v24, %v1136_v63 }
 0x1ea   :  { %v4824_v62 = vrot.slane %v1588_v8, %v4798_v50  ;;  %v1962_v59 = vcombine.low %v1580_v1, %v4821_v58  ;;  %v4829_v32 = vcombine.high %v4821_v58, %v4821_v58 }
 0x1ec   :  { %v1732_v22 = vcombine.low %v4821_v58, %v4824_v62  ;;  %v1977_v20 = vrot.slane %v1962_v59, %v4798_v50  ;;  %v1848_v12 = vcombine.low %v4824_v62, %v4829_v32  ;;  %v2061_v9 = vcombine.low %v1674_v0, %v4824_v62 }
 0x1ed   :  { %v3384_v39 = vcombine.high %v4821_v58, %v4824_v62  ;;  %v1675_v17 = vcombine.high %v4824_v62, %v4824_v62 }
 0x1ee   :  { %v1985_v10 = vcombine.low %v1970_v40, %v1977_v20  ;;  %v1760_v53 = vrot.slane %v1732_v22, %v4798_v50  ;;  %v4842_v60 = vrot.slane %v1848_v12, %v4798_v50  ;;  %v2070_v18 = vrot.slane %v2061_v9, %v4798_v50  ;;  %v1312_v52 = vpop.permute.xlu1 %1311 }
 0x1ef   :  { %v4900_v59 = vrot.slane %v3384_v39, %v4798_v50 }
 0x1f0   :  { %v1762_v45 = vcombine.low %v1753_v46, %v1760_v53  ;;  %v1878_v3 = vcombine.low %v1869_v34, %v4842_v60  ;;  %v4846_v51 = vcombine.low %v1753_v46, %v2070_v18  ;;  %v1138_v21 = vpop.permute.xlu0 %1137  ;;  %v4906_v40 = vrot.slane %v1985_v10, %v4798_v50 }
 0x1f1   :  { %v1509_v41 = vsel %vm1503_vm4, %v4757_v15, %v1138_v21 }
 0x1f2   :  { %v4852_v43 = vrot.slane %v1762_v45, %v4798_v50  ;;  %v1892_v35 = vrot.slane %v1878_v3, %v4798_v50  ;;  %v2093_v0 = vrot.slane %v4846_v51, %v4798_v50  ;;  %v3799_v51 = vld [vmem:[%s5223_s3 + $0xa8] sm:$0xff]  }
 0x1f4   :  { %v1314_v61 = vpop.permute.xlu1 %1313  ;;  %v1777_v7 = vcombine.low %v4849_v2, %v4852_v43  ;;  %v4858_v25 = vcombine.low %v1885_v27, %v1892_v35 }
 0x1f5   :  { %v1517_v28 = vsel %vm227_vm0, %v1509_v41, %v1314_v61 }
 0x1f7   :  { %v1140_v47 = vpop.permute.xlu0 %1139 }
 0x1f8   :  { %v1490_v36 = vpop.permute.xlu1 %1489  ;;  %v1510_v14 = vsel %vm1503_vm4, %v4779_v31, %v1140_v47  ;;  %v1516_v31 = vsel %vm227_vm0, %v1508_v38, %v1312_v52 }
 0x1f9   :  { %v1526_v13 = vsel %vm1520_vm5, %v1517_v28, %v1490_v36 }
 0x1fa   :  { %v1633_v57 = vrot.slane %v1526_v13, %v4798_v50 }
 0x1fc   :  { %v1634_v42 = vcombine.high %v1633_v57, %v1633_v57  ;;  %v1492_v54 = vpop.permute.xlu1 %1491  ;;  %v4866_v5 = vrot.slane %v1633_v57, %v4798_v50 }
 0x1fe   :  { %v1316_v44 = vpop.permute.xlu0 %1315  ;;  %v4872_v15 = vrot.slane %v1634_v42, %v4798_v50  ;;  %v1649_v55 = vcombine.high %v4866_v5, %v4866_v5 }
 0x1ff   :  { %v1518_v11 = vsel %vm227_vm0, %v1510_v14, %v1316_v44 }
 0x200   :  { %v1527_v56 = vsel %vm1520_vm5, %v1518_v11, %v1492_v54  ;;  %v1780_v26 = vcombine.low %v4866_v5, %v4872_v15  ;;  %v1677_v8 = vcombine.high %v4872_v15, %v4872_v15  ;;  %v1896_v58 = vcombine.low %v4872_v15, %v1649_v55 }
 0x201   :  { %v1656_v37 = vrot.slane %v1527_v56, %v4798_v50 }
 0x202   :  { %v1310_v30 = vpop.permute.xlu1 %1309  ;;  %v1802_v20 = vrot.slane %v1780_v26, %v4798_v50  ;;  %v4918_v52 = vrot.slane %v1896_v58, %v4798_v50 }
 0x203   :  { %v1657_v23 = vcombine.high %v1656_v37, %v1656_v37  ;;  %v4884_v19 = vrot.slane %v1656_v37, %v4798_v50 }
 0x205   :  { %v1488_v6 = vpop.permute.xlu0 %1487  ;;  %v4890_v1 = vrot.slane %v1657_v23, %v4798_v50  ;;  %v1781_v48 = vcombine.low %v1649_v55, %v4884_v19  ;;  %v1672_v44 = vcombine.high %v4884_v19, %v4884_v19 }
 0x206   :  { %v1525_v29 = vsel %vm1520_vm5, %v1516_v31, %v1488_v6  ;;  %v1486_v34 = vpop.permute.xlu1 %1485 }
 0x207   :  { %v1610_v24 = vrot.slane %v1525_v29, %v4798_v50  ;;  %v1897_v22 = vcombine.low %v1677_v8, %v4890_v1  ;;  %v1809_v12 = vrot.slane %v1781_v48, %v4798_v50  ;;  %v3383_v61 = vcombine.high %v4884_v19, %v4890_v1 }
 0x208   :  { %v2003_v54 = vcombine.low %v4884_v19, %v4890_v1  ;;  %v1827_v58 = vcombine.low %v4890_v1, %v1672_v44 }
 0x209   :  { %v1611_v63 = vcombine.high %v1610_v24, %v1610_v24  ;;  %v1618_v4 = vrot.slane %v1610_v24, %v4798_v50  ;;  %v1134_v49 = vpop.permute.xlu0 %1133  ;;  %v1811_v45 = vcombine.low %v1802_v20, %v1809_v12  ;;  %v1950_v31 = vrot.slane %v3383_v61, %v4798_v50 }
 0x20a   :  { %v1507_v62 = vsel %vm1503_vm4, %v4786_v16, %v1134_v49  ;;  %v1925_v16 = vrot.slane %v1897_v22, %v4798_v50  ;;  %v1834_v2 = vrot.slane %v1827_v58, %v4798_v50 }
 0x20b   :  { %v1625_v9 = vrot.slane %v1611_v63, %v4798_v50  ;;  %v1626_v46 = vcombine.high %v1618_v4, %v1618_v4  ;;  %v1778_v53 = vcombine.low %v4829_v32, %v1618_v4  ;;  %v1515_v18 = vsel %vm227_vm0, %v1507_v62, %v1310_v30  ;;  %v1494_v38 = vpop.permute.xlu1 %1493 }
 0x20c   :  { %v1524_v10 = vsel %vm1520_vm5, %v1515_v18, %v1486_v34  ;;  %v3385_v32 = vcombine.high %v4866_v5, %v4872_v15  ;;  %v1927_v36 = vcombine.low %v4918_v52, %v1925_v16  ;;  %v1957_v62 = vrot.slane %v1950_v31, %v4798_v50  ;;  %v3802_v31 = vld [vmem:[%s5223_s3 + $0xd8] sm:$0xff]  }
 0x20d   :  { %v1779_v3 = vcombine.low %v1625_v9, %v1626_v46  ;;  %v3382_v27 = vcombine.high %v1618_v4, %v1625_v9  ;;  %v1687_v35 = vrot.slane %v1524_v10, %v4798_v50  ;;  %v1142_v21 = vpop.permute.xlu0 %1141  ;;  %v1788_v41 = vrot.slane %v1778_v53, %v4798_v50 }
 0x20e   :  { %v1894_v28 = vcombine.low %v1675_v17, %v1625_v9  ;;  %v1511_v14 = vsel %vm1503_vm4, %v4790_v33, %v1142_v21  ;;  %v1941_v6 = vrot.slane %v1927_v36, %v4798_v50  ;;  %v1825_v33 = vrot.slane %v1811_v45, %v4798_v50 }
 0x20f   :  { %v1688_v47 = vcombine.high %v1687_v35, %v1687_v35  ;;  %v1695_v13 = vrot.slane %v1687_v35, %v4798_v50  ;;  %v1911_v57 = vrot.slane %v3382_v27, %v4798_v50  ;;  %v1795_v42 = vrot.slane %v1779_v3, %v4798_v50 }
 0x210   :  { %v1904_v11 = vrot.slane %v1894_v28, %v4798_v50  ;;  %v1678_v18 = vcombine.high %v4890_v1, %v4890_v1  ;;  %v2166_v43 = vpack.c.bf16 %v1957_v62, %v1957_v62  ;;  %v2018_v27 = vrot.slane %v2003_v54, %v4798_v50 }
 0x211   :  { %v1702_v56 = vrot.slane %v1688_v47, %v4798_v50  ;;  %v1703_v37 = vcombine.high %v1695_v13, %v1695_v13  ;;  %v1318_v39 = vpop.permute.xlu0 %1317  ;;  %v1810_v55 = vcombine.low %v1788_v41, %v1795_v42  ;;  %v3797_v41 = vld [vmem:[%s5223_s3 + $0xb0] sm:$0xff]   ;;  %v3798_v47 = vld [vmem:[%s5223_s3 + $0xe8] sm:$0xff]  }
 0x212   :  { %v1519_v23 = vsel %vm227_vm0, %v1511_v14, %v1318_v39  ;;  %v1926_v30 = vcombine.low %v1904_v11, %v1911_v57  ;;  %v3800_v14 = vld [vmem:[%s5223_s3 + $0xe0] sm:$0xff]  }
 0x213   :  { %v1727_v26 = vcombine.high %v1702_v56, %v1702_v56  ;;  %v1963_v29 = vcombine.low %v1695_v13, %v1702_v56  ;;  %v2002_v19 = vcombine.low %v1703_v37, %v4866_v5  ;;  %v2063_v24 = vcombine.low %v1702_v56, %v1703_v37 }
 0x214   :  { %v1528_v48 = vsel %vm1520_vm5, %v1519_v23, %v1494_v38  ;;  %v1934_v17 = vrot.slane %v1926_v30, %v4798_v50  ;;  %v1818_v8 = vrot.slane %v1810_v55, %v4798_v50  ;;  %v1841_v13 = vrot.slane %v1834_v2, %v4798_v50  ;;  %v3801_v38 = vld [vmem:[%s5223_s3 + $0xa0] sm:$0xff]   ;;  %v3803_v23 = vld [vmem:[%s5223_s3 + $0x98] sm:$0xff]   ;;  %v3804_v30 = vld [vmem:[%s5223_s3 + $0xd0] sm:$0xff]  }
 0x215   :  { %v1710_v63 = vrot.slane %v1528_v48, %v4798_v50  ;;  %v1984_v4 = vrot.slane %v1963_v29, %v4798_v50  ;;  %v2011_v49 = vrot.slane %v2002_v19, %v4798_v50  ;;  %v2084_v5 = vrot.slane %v2063_v24, %v4798_v50  ;;  %v3807_v29 = vld [vmem:[%s5223_s3 + $0x88] sm:$0xff]   ;;  %v3808_v24 = vld [vmem:[%s5223_s3 + $0xc0] sm:$0xff]  }
 0x216   :  { %v1942_v22 = vcombine.low %v1934_v17, %v1941_v6  ;;  %v1826_v20 = vcombine.low %v1818_v8, %v1825_v33  ;;  %v2102_v12 = vcombine.low %v1727_v26, %v4872_v15  ;;  %v3795_v15 = vld [vmem:[%s5223_s3 + $0xb8] sm:$0xff]   ;;  %v3805_v6 = vld [vmem:[%s5223_s3 + $0x90] sm:$0xff]   ;;  %v3806_v33 = vld [vmem:[%s5223_s3 + $0xc8] sm:$0xff]  }
 0x217   :  { %v1711_v9 = vcombine.high %v1710_v63, %v1710_v63  ;;  %v4955_v46 = vrot.slane %v1710_v63, %v4798_v50  ;;  %v1986_v53 = vcombine.low %v4842_v60, %v1984_v4  ;;  %v2026_v34 = vcombine.low %v2011_v49, %v4918_v52  ;;  %v3809_v17 = vld [vmem:[%s5223_s3 + $0x80] sm:$0xff]  }
 0x218   :  { %v2162_v10 = vpack.c.bf16 %v1942_v22, %v4858_v25  ;;  %v2161_v16 = vpack.c.bf16 %v1826_v20, %v1777_v7  ;;  %v2086_v45 = vcombine.low %v4900_v59, %v2084_v5  ;;  %v3796_v25 = vld [vmem:[%s5223_s3 + $0xf0] sm:$0xff]   ;;  %v2111_v1 = vrot.slane %v2102_v12, %v4798_v50  ;;  %v3810_v22 = vld [vmem:[%s5225_s5 + $0x78] sm:$0xff]  }
 0x219   :  { %v4970_v3 = vrot.slane %v1711_v9, %v4798_v50  ;;  %v2004_v60 = vcombine.low %v1672_v44, %v4955_v46  ;;  %v2000_v52 = vrot.slane %v1986_v53, %v4798_v50  ;;  %v2118_v59 = vrot.slane %v3385_v32, %v4798_v50  ;;  %v3811_v20 = vld [vmem:[%s5225_s5 + $0x38] sm:$0xff]   ;;  %v3812_v5 = vld [vmem:[%s5225_s5 + $0x70] sm:$0xff]   ;;  %3586 = vmatprep.subr.bf16.mxu0 %v3810_v22  ;;  %v3814_v53 = vld [vmem:[%s5225_s5 + $0x68] sm:$0xff]  }
 0x21a   :  { %2464 = vmatprep.mubr.bf16.mxu1 %v2162_v10  ;;  %v2100_v7 = vrot.slane %v2086_v45, %v4798_v50  ;;  %v2034_v42 = vrot.slane %v2026_v34, %v4798_v50  ;;  %v1726_v19 = vcombine.high %v4955_v46, %v4955_v46  ;;  %3587 = vmatpush3.bf16.msra.mxu0 %v3811_v20  ;;  %v3813_v12 = vld [vmem:[%s5225_s5 + $0x30] sm:$0xff]   ;;  %v3820_v9 = vld [vmem:[%s5225_s5 + $0xf8] sm:$0xff]   ;;  %v3815_v10 = vld [vmem:[%s5225_s5 + $0x28] sm:$0xff]  }
 0x21b   :  { %v2025_v35 = vrot.slane %v2004_v60, %v4798_v50  ;;  %v2104_v21 = vcombine.low %v1678_v18, %v4970_v3  ;;  %2465 = vmatmul.mubr.bf16.vlgmr.msra.gmra.mxu1 %v2161_v16  ;;  %v2001_v61 = vcombine.low %v4906_v40, %v2000_v52  ;;  %v2126_v32 = vcombine.low %v2111_v1, %v2118_v59  ;;  %v3822_v34 = vld [vmem:[%s5225_s5 + $0xf0] sm:$0xff]   ;;  %v3826_v16 = vld [vmem:[%s5225_s5 + $0xe8] sm:$0xff]   ;;  %v3828_v60 = vld [vmem:[%s5225_s5 + $0xe0] sm:$0xff]  }
 0x21c   :  { %3559 = vmatpush3.bf16.msra.mxu1 %v3795_v15  ;;  %2472 = vmatprep.mubr.bf16.mxu1 %v2166_v43  ;;  %v2101_v28 = vcombine.low %v2093_v0, %v2100_v7  ;;  %v2165_v0 = vpack.c.bf16 %v1841_v13, %v1841_v13  ;;  %v3386_v26 = vcombine.high %v4955_v46, %v4970_v3  ;;  %v3821_v46 = vld [vmem:[%s5225_s5 + $0xb8] sm:$0xff]   ;;  %v3824_v18 = vld [vmem:[%s5225_s5 + $0xb0] sm:$0xff]   ;;  %v3816_v15 = vld [vmem:[%s5225_s5 + $0x60] sm:$0xff]  }
 0x21d   :  { %v2027_v36 = vcombine.low %v2018_v27, %v2025_v35  ;;  %3560 = vmatprep.subr.bf16.mxu1 %v3796_v25  ;;  %v2125_v40 = vrot.slane %v2104_v21, %v4798_v50  ;;  %v2134_v44 = vrot.slane %v2126_v32, %v4798_v50  ;;  %v2043_v8 = vcombine.low %v4970_v3, %v1726_v19  ;;  %v3827_v45 = vld [vmem:[%s5225_s5 + $0xa8] sm:$0xff]   ;;  %v3817_v3 = vld [vmem:[%s5225_s5 + $0x20] sm:$0xff]   ;;  %v3818_v52 = vld [vmem:[%s5225_s5 + $0x58] sm:$0xff]  }
 0x21e   :  { %v2150_v48 = vrot.slane %v3386_v26, %v4798_v50  ;;  %3588 = vmatprep.subr.bf16.mxu0 %v3812_v5  ;;  %v3830_v25 = vld [vmem:[%s5225_s5 + $0xa0] sm:$0xff]   ;;  %v3832_v43 = vld [vmem:[%s5225_s5 + $0xd8] sm:$0xff]   ;;  %v3823_v7 = vld [vmem:[%s5225_s5 + $0x50] sm:$0xff]  }
 0x21f   :  { %v2041_v57 = vrot.slane %v2027_v36, %v4798_v50  ;;  %v2127_v54 = vcombine.low %v1834_v2, %v2125_v40  ;;  %v2050_v63 = vrot.slane %v2043_v8, %v4798_v50  ;;  %3589 = vmatpush3.bf16.msra.mxu0 %v3813_v12  ;;  %v3819_v2 = vld [vmem:[%s5225_s5 + $0x18] sm:$0xff]   ;;  %v3825_v59 = vld [vmem:[%s5225_s5 + $0x10] sm:$0xff]   ;;  %v3829_v35 = vld [vmem:[%s5225_s5 + $0x48] sm:$0xff]  }
 0x220   :  { %3561 = vmatpush3.bf16.msra.mxu1 %v3797_v41  ;;  %v2157_v58 = vrot.slane %v2150_v48, %v4798_v50  ;;  %3590 = vmatprep.subr.bf16.mxu0 %v3814_v53  ;;  %v3833_v1 = vld [vmem:[%s5225_s5 + $0x98] sm:$0xff]   ;;  %v3834_v27 = vld [vmem:[%s5225_s5 + $0xd0] sm:$0xff]   ;;  %v3835_v41 = vld [vmem:[%s5225_s5 + $0x40] sm:$0xff]  }
 0x221   :  { %3562 = vmatprep.subr.bf16.mxu1 %v3798_v47  ;;  %v2141_v11 = vrot.slane %v2127_v54, %v4798_v50  ;;  %v2042_v56 = vcombine.low %v2034_v42, %v2041_v57  ;;  %v2057_v49 = vrot.slane %v2050_v63, %v4798_v50  ;;  %v3836_v21 = vld [vmem:[%s5225_s5 + $0x90] sm:$0xff]  }
 0x222   :  { %v2168_v4 = vpack.c.bf16 %v2157_v58, %v2157_v58 }
 0x223   :  { %2473 = vmatmul.mubr.bf16.gmra.mxu1 %v2165_v0  ;;  %v2142_v37 = vcombine.low %v2134_v44, %v2141_v11  ;;  %v2163_v39 = vpack.c.bf16 %v2042_v56, %v2001_v61  ;;  %v2167_v62 = vpack.c.bf16 %v2057_v49, %v2057_v49  ;;  %3591 = vmatpush3.bf16.msra.mxu0 %v3815_v10  ;;  %v3831_v61 = vld [vmem:[%s5225_s5 + $0x8] sm:$0xff]   ;;  %v3387_v0 = vld [vmem:[%s5224_s4] ss:$0 sm:$0xff]  ;;  %s3879_s4 = smov [#allocation2]  }
 0x224   :  { %3563 = vmatpush3.bf16.msra.mxu1 %v3799_v51  ;;  %3592 = vmatprep.subr.bf16.mxu0 %v3816_v15  ;;  %s3324_s20 = sshll.u32 %s3879_s4, 4  ;;  %s3325_s20 = int_to_ptr.vmem [resolvable:$true] %s3324_s20 }
 0x225   :  { %3564 = vmatprep.subr.bf16.mxu1 %v3800_v14  ;;  %v2164_v55 = vpack.c.bf16 %v2142_v37, %v2101_v28  ;;  %v3837_v28 = vld [vmem:[%s5225_s5] sm:$0xff]   ;;  %p3855_p1 = scmp.lt.s32.totalorder %s3325_s20, %s3325_s20 }
 0x227   :  { %2512 = vmatprep.mubr.bf16.mxu1 %v2164_v55  ;;  %3593 = vmatpush3.bf16.msra.mxu0 %v3817_v3 }
 0x228   :  { %3565 = vmatpush3.bf16.msra.mxu1 %v3801_v38  ;;  %3594 = vmatprep.subr.bf16.mxu0 %v3818_v52 }
 0x229   :  { %3566 = vmatprep.subr.bf16.mxu1 %v3802_v31 }
 0x22b   :  { %3595 = vmatpush3.bf16.msra.mxu0 %v3819_v2 }
 0x22c   :  { %3567 = vmatpush3.bf16.msra.mxu1 %v3803_v23  ;;  %3596 = vmatprep.subr.bf16.mxu0 %v3823_v7 }
 0x22d   :  { %3568 = vmatprep.subr.bf16.mxu1 %v3804_v30 }
 0x22f   :  { %3597 = vmatpush3.bf16.msra.mxu0 %v3825_v59  ;;  %v3838_v59 = vld [vmem:[%s5225_s5 + $0xc8] sm:$0xff]  }
 0x230   :  { %3569 = vmatpush3.bf16.msra.mxu1 %v3805_v6  ;;  %3598 = vmatprep.subr.bf16.mxu0 %v3829_v35 }
 0x231   :  { %3570 = vmatprep.subr.bf16.mxu1 %v3806_v33 }
 0x233   :  { %3599 = vmatpush3.bf16.msra.mxu0 %v3831_v61 }
 0x234   :  { %3571 = vmatpush3.bf16.msra.mxu1 %v3807_v29  ;;  %3600 = vmatprep.subr.bf16.mxu0 %v3835_v41 }
 0x235   :  { %3572 = vmatprep.subr.bf16.mxu1 %v3808_v24 }
 0x237   :  { %3601 = vmatpush3.bf16.msra.mxu0 %v3837_v28  ;;  %v3840_v28 = vld [vmem:[%s5225_s5 + $0xc0] sm:$0xff]  }
 0x238   :  { %3573 = vmatpush3.bf16.msra.mxu1 %v3809_v17 }
 0x239   :  { %3608 = vmatprep.subr.bf16.mxu1 %v3820_v9 }
 0x23b   :  { %2513 = vmatmul.mubr.bf16.vlgmr.msra.gmra.mxu1 %v2163_v39 }
 0x23c   :  { %2520 = vmatprep.mubr.bf16.mxu1 %v2168_v4  ;;  %3609 = vmatpush3.bf16.msra.mxu1 %v3821_v46 }
 0x23d   :  { %3610 = vmatprep.subr.bf16.mxu1 %v3822_v34 }
 0x240   :  { %3611 = vmatpush3.bf16.msra.mxu1 %v3824_v18 }
 0x241   :  { %3612 = vmatprep.subr.bf16.mxu1 %v3826_v16 }
 0x243   :  { %2521 = vmatmul.mubr.bf16.gmra.mxu1 %v2167_v62 }
 0x244   :  { %3613 = vmatpush3.bf16.msra.mxu1 %v3827_v45 }
 0x245   :  { %3614 = vmatprep.subr.bf16.mxu1 %v3828_v60 }
 0x248   :  { %3615 = vmatpush3.bf16.msra.mxu1 %v3830_v25 }
 0x249   :  { %3616 = vmatprep.subr.bf16.mxu1 %v3832_v43 }
 0x24c   :  { %3617 = vmatpush3.bf16.msra.mxu1 %v3833_v1 }
 0x24d   :  { %3618 = vmatprep.subr.bf16.mxu1 %v3834_v27  ;;  %v3839_v27 = vld [vmem:[%s5225_s5 + $0x88] sm:$0xff]  }
 0x250   :  { %3619 = vmatpush3.bf16.msra.mxu1 %v3836_v21 }
 0x251   :  { %3620 = vmatprep.subr.bf16.mxu1 %v3838_v59 }
 0x254   :  { %3621 = vmatpush3.bf16.msra.mxu1 %v3839_v27 }
 0x255   :  { %3622 = vmatprep.subr.bf16.mxu1 %v3840_v28 }
 0x2db   :  { %v3546_v32 = vpop.f32.mrf.mxu1 }
 0x2dd   :  { %v3547_v36 = vpop.f32.mrf.mxu1 }
 0x2de   :  { %v3548_v51 = vadd.f32 %v3547_v36, %v3546_v32 }
 0x2df   :  { %v3549_v47 = vpop.f32.mrf.mxu1 }
 0x2e0   :  { %v2467_v11 = vadd.f32 %v3548_v51, %v3387_v0 }
 0x2e1   :  { %v3550_v13 = vpop.f32.mrf.mxu1 }
 0x2e2   :  { %v3551_v56 = vadd.f32 %v3550_v13, %v3549_v47 }
 0x2e3   :  { %v3552_v40 = vpop.f32.mrf.mxu1 }
 0x2e4   :  { %v2470_v31 = vadd.f32 %v3551_v56, %v3387_v0 }
 0x2e5   :  { %v3553_v57 = vpop.f32.mrf.mxu1 }
 0x2e6   :  { %v3554_v6 = vadd.f32 %v3553_v57, %v3552_v40 }
 0x2e7   :  { %v3555_v42 = vpop.f32.mrf.mxu1 }
 0x2e8   :  { %v2475_v58 = vadd.f32 %v3554_v6, %v3387_v0  ;;  %v3841_v42 = vld [vmem:[%s5225_s5 + $0x80] sm:$0xff]  }
 0x2e9   :  { %v3556_v54 = vpop.f32.mrf.mxu1  ;;  %3623 = vmatpush3.bf16.msra.mxu1 %v3841_v42 }
 0x2fb   :  { %v3574_v14 = vpop.f32.mrf.mxu1 }
 0x2fd   :  { %v3575_v44 = vpop.f32.mrf.mxu1 }
 0x2fe   :  { %v3576_v37 = vadd.f32 %v3575_v44, %v3574_v14 }
 0x2ff   :  { %v3577_v39 = vpop.f32.mrf.mxu1 }
 0x300   :  { %v2515_v38 = vadd.f32 %v3576_v37, %v2467_v11 }
 0x301   :  { %v3578_v55 = vpop.f32.mrf.mxu1 }
 0x302   :  { %v2528_v23 = vmax.f32 %v2515_v38, 0.0  ;;  %v3579_v30 = vadd.f32 %v3578_v55, %v3577_v39  ;;  %v3877_v39 = vmov 0.0  }
 0x303   :  { %v3580_v33 = vpop.f32.mrf.mxu1  ;;  %3640 = vmatprep.subr.bf16.mxu0 %v3877_v39  ;;  %3652 = vmatprep.subr.bf16.mxu1 %v3877_v39 }
 0x304   :  { %v2534_v26 = vcombine.high %v2528_v23, %v2528_v23  ;;  %v2541_v29 = vrot.slane %v2528_v23, %v4798_v50  ;;  %v2518_v19 = vadd.f32 %v3579_v30, %v2470_v31 }
 0x305   :  { %v3581_v24 = vpop.f32.mrf.mxu1 }
 0x306   :  { %v2548_v48 = vrot.slane %v2534_v26, %v4798_v50  ;;  %v2549_v17 = vcombine.high %v2541_v29, %v2541_v29  ;;  %v2529_v8 = vmax.f32 %v2518_v19, 0.0  ;;  %v3582_v63 = vadd.f32 %v3581_v24, %v3580_v33 }
 0x307   :  { %v3583_v4 = vpop.f32.mrf.mxu1  ;;  %v2557_v10 = vrot.slane %v2541_v29, %v4798_v50 }
 0x308   :  { %v2550_v49 = vcombine.high %v2548_v48, %v2548_v48  ;;  %v2571_v62 = vrot.slane %v2549_v17, %v4798_v50  ;;  %v2583_v22 = vcombine.high %v2529_v8, %v2529_v8  ;;  %v2590_v20 = vrot.slane %v2529_v8, %v4798_v50 }
 0x309   :  { %v2523_v5 = vadd.f32 %v3582_v63, %v2475_v58  ;;  %v3584_v12 = vpop.f32.mrf.mxu1  ;;  %v2564_v3 = vrot.slane %v2548_v48, %v4798_v50 }
 0x30a   :  { %v2578_v9 = vrot.slane %v2550_v49, %v4798_v50  ;;  %v2597_v46 = vrot.slane %v2583_v22, %v4798_v50  ;;  %v2598_v53 = vcombine.high %v2590_v20, %v2590_v20  ;;  %v5136_v34 = vrot.slane %v2590_v20, %v4798_v50  ;;  %v3842_v12 = vld [vmem:[%s5225_s5 + $0x118] sm:$0xff]  }
 0x30b   :  { %v2530_v18 = vmax.f32 %v2523_v5, 0.0  ;;  %v2581_v16 = vcombine.high %v2571_v62, %v2571_v62 }
 0x30c   :  { %v2599_v15 = vcombine.high %v2597_v46, %v2597_v46  ;;  %v2613_v45 = vrot.slane %v2597_v46, %v4798_v50  ;;  %v2620_v60 = vrot.slane %v2598_v53, %v4798_v50  ;;  %v2628_v52 = vcombine.high %v5136_v34, %v5136_v34 }
 0x30d   :  { %v2638_v25 = vrot.slane %v2530_v18, %v4798_v50  ;;  %v2582_v7 = vcombine.high %v2578_v9, %v2578_v9  ;;  %v3844_v18 = vld [vmem:[%s5225_s5 + $0x108] sm:$0xff]  }
 0x30e   :  { %v2627_v2 = vrot.slane %v2599_v15, %v4798_v50  ;;  %v2629_v43 = vcombine.high %v2613_v45, %v2613_v45  ;;  %v2704_v1 = vcombine.low %v2581_v16, %v2613_v45  ;;  %v2654_v35 = vcombine.low %v2557_v10, %v2620_v60  ;;  %v3845_v16 = vld [vmem:[%s5225_s5 + $0x100] sm:$0xff]  }
 0x30f   :  { %v3420_v21 = vcombine.high %v2557_v10, %v2620_v60  ;;  %v2639_v61 = vcombine.high %v2638_v25, %v2638_v25  ;;  %v2646_v41 = vrot.slane %v2638_v25, %v4798_v50  ;;  %v2670_v36 = vcombine.low %v2571_v62, %v2628_v52  ;;  %v3847_v60 = vld [vmem:[%s5227_s7 + $0x10] sm:$0xff]   ;;  %v3849_v52 = vld [vmem:[%s5227_s7] sm:$0xff]  }
 0x310   :  { %v2722_v32 = vcombine.low %v2564_v3, %v2627_v2  ;;  %v2711_v47 = vrot.slane %v2704_v1, %v4798_v50  ;;  %v2738_v13 = vcombine.low %v2578_v9, %v2629_v43  ;;  %v3421_v38 = vcombine.high %v2564_v3, %v2627_v2  ;;  %v3846_v3 = vld [vmem:[%s5227_s7 + $0x18] sm:$0xff]  }
 0x311   :  { %v2653_v40 = vrot.slane %v2639_v61, %v4798_v50  ;;  %v2772_v57 = vcombine.low %v2582_v7, %v2646_v41  ;;  %v2677_v54 = vrot.slane %v2670_v36, %v4798_v50  ;;  %v2661_v23 = vrot.slane %v2654_v35, %v4798_v50  ;;  %v3422_v61 = vld [vmem:[%s5226_s6] ss:$0 sm:$0xff]  ;;  %s3850_s6 = scalar_lea.vmem %s3325_s20, 32 }
 0x312   :  { %v2718_v51 = vrot.slane %v2711_v47, %v4798_v50  ;;  %v2745_v0 = vrot.slane %v2738_v13, %v4798_v50  ;;  %v2695_v30 = vrot.slane %v3420_v21, %v4798_v50  ;;  %v2729_v6 = vrot.slane %v2722_v32, %v4798_v50  ;;  %p3851_p0 = scmp.ne.s32.totalorder %s3325_s20, %s3850_s6  ;;  %p3856_p2 = scmp.lt.s32.totalorder %s3850_s6, %s3850_s6 }
 0x313   :  { %v2790_v14 = vcombine.low %v5136_v34, %v2653_v40  ;;  %v2779_v44 = vrot.slane %v2772_v57, %v4798_v50  ;;  %v2684_v11 = vrot.slane %v2677_v54, %v4798_v50  ;;  %v2763_v33 = vrot.slane %v3421_v38, %v4798_v50  ;;  %v3843_v34 = vld [vmem:[%s5225_s5 + $0x110] sm:$0xff]  }
 0x314   :  { %v2752_v56 = vrot.slane %v2745_v0, %v4798_v50  ;;  %v2668_v29 = vrot.slane %v2661_v23, %v4798_v50  ;;  %v2702_v17 = vrot.slane %v2695_v30, %v4798_v50  ;;  %v2736_v8 = vrot.slane %v2729_v6, %v4798_v50  ;;  %p3857_p3 = por %p3856_p2, %p3855_p1 }
 0x315   :  { %v2786_v37 = vrot.slane %v2779_v44, %v4798_v50  ;;  %v3752_v55 = vpack.i.bf16 %v2684_v11, %v2718_v51  ;;  %v2770_v4 = vrot.slane %v2763_v33, %v4798_v50  ;;  %v2797_v10 = vrot.slane %v2790_v14, %v4798_v50  ;;  %v3460_v51 = vld [vmem:[%s5228_s8] ss:$0 sm:$0xff] }
 0x316   :  { %p3858_p4 = pnand %p3857_p3, %p3851_p0 }
 0x317   :  { %v3757_v31 = vpack.i.bf16 %v2752_v56, %v2786_v37  ;;  %3753 = vrot.lane.b32.xlu0 %v3752_v55, %s3872_s19  ;;  %v2804_v15 = vrot.slane %v2797_v10, %v4798_v50  ;;  %v3848_v50 = vld [vmem:[%s5227_s7 + $0x8] sm:$0xff]  }
 0x319   :  { %3758 = vrot.lane.b32.xlu1 %v3757_v31, %s3872_s19  ;;  %v2814_v45 = vpack.c.bf16 %v2804_v15, %v2804_v15 }
 0x389   :  { %v3754_v26 = vpop.permute.xlu0 %3753 }
 0x38a   :  { %v3756_v19 = vunpack.i.h.bf16 %v3754_v26  ;;  %v3755_v24 = vunpack.i.l.bf16 %v3754_v26 }
 0x38b   :  { %v3759_v48 = vpop.permute.xlu1 %3758 }
 0x38c   :  { %v3761_v58 = vunpack.i.h.bf16 %v3759_v48  ;;  %v3760_v63 = vunpack.i.l.bf16 %v3759_v48  ;;  %v2806_v49 = vsel %vm227_vm0, %v2668_v29, %v3756_v19  ;;  %v2807_v62 = vsel %vm227_vm0, %v2702_v17, %v3755_v24 }
 0x38d   :  { %v2810_v22 = vpack.c.bf16 %v2806_v49, %v2806_v49  ;;  %v2811_v5 = vpack.c.bf16 %v2807_v62, %v2807_v62 }
 0x38e   :  { %v2808_v20 = vsel %vm227_vm0, %v2736_v8, %v3761_v58  ;;  %v2809_v9 = vsel %vm227_vm0, %v2770_v4, %v3760_v63 }
 0x38f   :  { %v2812_v46 = vpack.c.bf16 %v2808_v20, %v2808_v20  ;;  %v2813_v53 = vpack.c.bf16 %v2809_v9, %v2809_v9  ;;  %3145 = vmatprep.mubr.bf16.mxu0 %v2811_v5 }
 0x390   :  { %3146 = vmatmul.mubr.bf16.vlgmr.msra.gmra.mxu0 %v2810_v22 }
 0x391   :  { %3185 = vmatprep.mubr.bf16.mxu1 %v2813_v53  ;;  %3641 = vmatpush3.bf16.msra.mxu0 %v3842_v12 }
 0x392   :  { %3186 = vmatmul.mubr.bf16.vlgmr.msra.gmra.mxu1 %v2812_v46  ;;  %3642 = vmatprep.subr.bf16.mxu0 %v3877_v39 }
 0x393   :  { %3648 = vmatprep.mubr.msk.bf16.mxu0 %vm3878_vm6, %v3877_v39  ;;  %3660 = vmatprep.mubr.msk.bf16.mxu1 %vm3878_vm6, %v3877_v39 }
 0x394   :  { %3653 = vmatpush3.bf16.msra.mxu1 %v3846_v3 }
 0x395   :  { %3643 = vmatpush3.bf16.msra.mxu0 %v3843_v34  ;;  %3654 = vmatprep.subr.bf16.mxu1 %v3877_v39 }
 0x396   :  { %3644 = vmatprep.subr.bf16.mxu0 %v3877_v39 }
 0x398   :  { %3655 = vmatpush3.bf16.msra.mxu1 %v3847_v60 }
 0x399   :  { %3645 = vmatpush3.bf16.msra.mxu0 %v3844_v18  ;;  %3656 = vmatprep.subr.bf16.mxu1 %v3877_v39 }
 0x39a   :  { %3646 = vmatprep.subr.bf16.mxu0 %v3877_v39 }
 0x39c   :  { %3657 = vmatpush3.bf16.msra.mxu1 %v3848_v50 }
 0x39d   :  { %3647 = vmatpush3.bf16.msra.mxu0 %v3845_v16  ;;  %3658 = vmatprep.subr.bf16.mxu1 %v3877_v39 }
 0x3a0   :  { %3649 = vmatmul.mubr.msk.bf16.vlgmr.msra.gmra.mxu0 %vm227_vm0, %v2814_v45  ;;  %3659 = vmatpush3.bf16.msra.mxu1 %v3849_v52 }
 0x450   :  { %v3602_v25 = vpop.f32.mrf.mxu0 }
 0x452   :  { %v3624_v2 = vpop.f32.mrf.mxu1  ;;  %v3603_v43 = vpop.f32.mrf.mxu0 }
 0x453   :  { %v3604_v35 = vadd.f32 %v3603_v43, %v3602_v25 }
 0x454   :  { %v3625_v7 = vpop.f32.mrf.mxu1  ;;  %v3605_v1 = vpop.f32.mrf.mxu0 }
 0x455   :  { %v3148_v41 = vadd.f32 %v3604_v35, %v3422_v61  ;;  %v3626_v28 = vadd.f32 %v3625_v7, %v3624_v2 }
 0x456   :  { %v3627_v59 = vpop.f32.mrf.mxu1  ;;  %v3606_v27 = vpop.f32.mrf.mxu0 }
 0x457   :  { %v3188_v32 = vadd.f32 %v3626_v28, %v3148_v41 }
 0x458   :  { %v3628_v21 = vpop.f32.mrf.mxu1 }
 0x460   :  { %v3227_v36 = vpop.f32.mrf.mxu0 }
 0x461   :  { %v3228_v47 = vadd.f32 %v3227_v36, %v3188_v32 }
 0x462   :  { %v3650_v13 = vpop.f32.mrf.mxu0 }
 0x463   :  { %v3233_v40 = vmax.f32 %v3228_v47, 0.0 }
 0x464   :  { %v3230_v57 = vpop.f32.mrf.mxu0 }
 0x465   :  { %v3234_v42 = vpack.c.bf16 %v3233_v40, %v3233_v40 }
 0x466   :  { %v3651_v54 = vpop.f32.mrf.mxu0 }
 0x467   :  { %3661 = vmatmul.mubr.msk.bf16.vlgmr.msra.gmra.mxu1 %vm227_vm0, %v3234_v42 }
 0x527   :  { %v3311_v0 = vpop.f32.mrf.mxu1 }
 0x528   :  { %v3312_v14 = vadd.f32 %v3460_v51, %v3311_v0 }
 0x529   :  { %v3662_v44 = vpop.f32.mrf.mxu1 }
 0x52a   :  { %3317 = vst [vmem:[#allocation2] sm:$0x3] %v3312_v14 }
 0x52b   :  { %v3314_v11 = vpop.f32.mrf.mxu1 }
 0x52c   :  { %3861 = shalt.err (!%p3858_p4)
}
 0x52d   :  { %3327 = dma.vmem_to_hbm [thread:$0]  %s3325_s20, 32, %s5229_s9, [#allocation3]   ;;  %v3663_v56 = vpop.f32.mrf.mxu1 }
 0x52e   :  { %3870 = dma.done.wait [#allocation3], 32  }
 0x52f   :  { %3871 = vsyncadd [#allocation3], 4294967264 }
 0x530   :  { %3331 = vsyncpa [#allocation3], 1 }

</bundles_post_ra>
